<compile_context>
chip_gen: v7x
topology: tpu7x:2x2x1
jax: 0.10.0
libtpu: 0.0.40
codegen_flags: <defaults>
</compile_context>

<pallas_src>
import functools

import jax
import jax.numpy as jnp
from jax.experimental import pallas as pl
from jax.experimental.pallas import tpu as pltpu


def _interp_matrix(out_size: int, in_size: int) -> jnp.ndarray:
    """(out_size, in_size) bilinear interpolation matrix, align_corners=True."""
    if out_size == 1:
        src = jnp.zeros((1,), jnp.float32)
    else:
        src = jnp.arange(out_size, dtype=jnp.float32) * (
            (in_size - 1) / (out_size - 1))
    i0 = jnp.clip(jnp.floor(src).astype(jnp.int32), 0, in_size - 1)
    i1 = jnp.clip(i0 + 1, 0, in_size - 1)
    frac = src - i0.astype(jnp.float32)
    oh0 = jax.nn.one_hot(i0, in_size, dtype=jnp.float32)
    oh1 = jax.nn.one_hot(i1, in_size, dtype=jnp.float32)
    return (1.0 - frac)[:, None] * oh0 + frac[:, None] * oh1


def _psp_kernel(x_ref, aht_ref, awt_ref, w_ref, bias_ref, o_ref, *,
                conv_first: bool, compute_dtype):
    c_in, h_in, w_in = x_ref.shape[1:]
    c_out = w_ref.shape[0]
    h_out = aht_ref.shape[1]
    w_out = awt_ref.shape[1]

    x = x_ref[0]          # (C_in, H, W), compute_dtype
    w2 = w_ref[...]       # (C_out, C_in), BN scale already folded in
    aht = aht_ref[...]    # (H, H_out)  == A_h^T
    awt = awt_ref[...]    # (W, W_out)  == A_w^T

    if conv_first:
        # --- 1x1 conv (BN scale folded) at input resolution: one MXU matmul ---
        z = jnp.dot(w2, x.reshape(c_in, h_in * w_in),
                    preferred_element_type=jnp.float32)          # (C_out, H*W)
        cur = z.astype(compute_dtype).reshape(c_out, h_in, w_in)
        c = c_out
    else:
        cur = x
        c = c_in

    # --- separable bilinear upsample (align_corners=True): two 2D MXU matmuls ---
    # width: contract W against A_w^T
    t = jnp.dot(cur.reshape(c * h_in, w_in), awt,
                preferred_element_type=jnp.float32)              # (C*H, W_out)
    t = t.astype(compute_dtype).reshape(c, h_in, w_out)
    # height: bring H to the minor (lane) dim with an XLU transpose, then one
    # big 2D matmul (no broadcast_to, no batched dot_general).
    t = jnp.swapaxes(t, 1, 2).reshape(c * w_out, h_in)           # (C*W_out, H)
    u = jnp.dot(t, aht, preferred_element_type=jnp.float32)      # (C*W_out, H_out)

    if conv_first:
        up = jnp.swapaxes(u.reshape(c, w_out, h_out), 1, 2)      # (C_out, H_out, W_out) f32
        y = up.reshape(c_out, h_out * w_out)                     # lane-dense
    else:
        up = jnp.swapaxes(u.astype(compute_dtype).reshape(c, w_out, h_out), 1, 2)
        up_flat = up.reshape(c_in, h_out * w_out)                # lane-dense
        # --- 1x1 conv (BN scale folded) at output resolution: one MXU matmul.
        # Result is already in the lane-dense (C_out, H_out*W_out) layout. ---
        y = jnp.dot(w2, up_flat, preferred_element_type=jnp.float32)

    # --- f32 epilogue: folded BN(eval)/conv bias, then ReLU ---
    y = y + bias_ref[...]                                        # (C_out, 1) bcast
    o_ref[0] = jnp.maximum(y, 0.0).astype(o_ref.dtype)


def psp_upsampler(x, conv_w, conv_b, gamma, beta, run_mean, run_var,
                  multiplier, eps=1e-5, compute_dtype=jnp.bfloat16):
    n, c_in, h, w = x.shape
    c_out = conv_w.shape[0]
    h_out, w_out = h * multiplier, w * multiplier

    # Transposed interpolation matrices so the source dim is contracted on MXU.
    a_h_t = _interp_matrix(h_out, h).T          # (H, H_out)
    a_w_t = _interp_matrix(w_out, w).T          # (W, W_out)

    # Fold BatchNorm (eval mode, running stats) + conv bias:
    #   BN(conv(u)) = (scale * W) @ u + (beta + scale * (conv_b - mean))
    scale = gamma * jax.lax.rsqrt(run_var + eps)                 # (C_out,)
    w2 = scale[:, None] * conv_w.reshape(c_out, c_in)            # (C_out, C_in)
    bias = (beta + scale * (conv_b - run_mean)).reshape(c_out, 1)

    # Conv and bilinear upsample commute; pick the cheaper order (MAC count).
    up_macs = lambda c: c * (h * w * w_out + w_out * h_out * h)
    conv_first = (c_out * c_in * h * w + up_macs(c_out)
                  < up_macs(c_in) + c_out * c_in * h_out * w_out)

    kernel = functools.partial(_psp_kernel, conv_first=conv_first,
                               compute_dtype=compute_dtype)

    # Explicit VMEM budget: double-buffered x/out blocks + constants +
    # intermediates, with generous headroom (clamped to stay safe on v7x).
    itemsize_c = jnp.dtype(compute_dtype).itemsize
    x_blk = c_in * h * w * itemsize_c
    out_blk = c_out * h_out * w_out * jnp.dtype(x.dtype).itemsize
    interm = (c_in + c_out) * h_out * w_out * 4 * 2
    consts = (h * h_out + w * w_out + c_out * c_in) * itemsize_c + c_out * 4
    vmem_limit = int(min(max(4 * (2 * (x_blk + out_blk) + consts + interm),
                             16 * 1024 * 1024), 48 * 1024 * 1024))

    out_flat = pl.pallas_call(
        kernel,
        out_shape=jax.ShapeDtypeStruct((n, c_out, h_out * w_out), x.dtype),
        grid_spec=pltpu.PrefetchScalarGridSpec(
            num_scalar_prefetch=0,
            grid=(n,),
            in_specs=[
                pl.BlockSpec((1, c_in, h, w), lambda i: (i, 0, 0, 0)),
                pl.BlockSpec((h, h_out), lambda i: (0, 0)),
                pl.BlockSpec((w, w_out), lambda i: (0, 0)),
                pl.BlockSpec((c_out, c_in), lambda i: (0, 0)),
                pl.BlockSpec((c_out, 1), lambda i: (0, 0)),
            ],
            out_specs=pl.BlockSpec((1, c_out, h_out * w_out),
                                   lambda i: (i, 0, 0)),
        ),
        compiler_params=pltpu.CompilerParams(
            dimension_semantics=("parallel",),
            vmem_limit_bytes=vmem_limit),
    )(x.astype(compute_dtype),
      a_h_t.astype(compute_dtype),
      a_w_t.astype(compute_dtype),
      w2.astype(compute_dtype),
      bias.astype(jnp.float32))

    return out_flat.reshape(n, c_out, h_out, w_out)


def psp_reference(x, conv_w, conv_b, gamma, beta, run_mean, run_var,
                  multiplier, eps=1e-5):
    """Plain-JAX f32 reference following the PyTorch op order (eval-mode BN)."""
    n, c_in, h, w = x.shape
    c_out = conv_w.shape[0]
    h_out, w_out = h * multiplier, w * multiplier
    a_h = _interp_matrix(h_out, h)
    a_w = _interp_matrix(w_out, w)
    up = jnp.einsum('yh,nchw,xw->ncyx', a_h, x, a_w)
    y = jnp.einsum('oc,ncyx->noyx', conv_w.reshape(c_out, c_in), up)
    y = y + conv_b[None, :, None, None]
    inv = 1.0 / jnp.sqrt(run_var + eps)
    y = (y - run_mean[None, :, None, None]) * inv[None, :, None, None]
    y = y * gamma[None, :, None, None] + beta[None, :, None, None]
    return jnp.maximum(y, 0.0)


if __name__ == "__main__":
    def run_case(key, n, c_in, c_out, h, w, mult):
        ks = jax.random.split(key, 7)
        x = jax.random.normal(ks[0], (n, c_in, h, w), jnp.float32)
        conv_w = jax.random.normal(ks[1], (c_out, c_in, 1, 1), jnp.float32) * 0.1
        conv_b = jax.random.normal(ks[2], (c_out,), jnp.float32) * 0.1
        gamma = 1.0 + 0.1 * jax.random.normal(ks[3], (c_out,), jnp.float32)
        beta = 0.1 * jax.random.normal(ks[4], (c_out,), jnp.float32)
        run_mean = 0.1 * jax.random.normal(ks[5], (c_out,), jnp.float32)
        run_var = jax.random.uniform(ks[6], (c_out,), jnp.float32,
                                     minval=0.5, maxval=1.5)

        out = jax.block_until_ready(
            psp_upsampler(x, conv_w, conv_b, gamma, beta,
                          run_mean, run_var, mult))
        ref = jax.block_until_ready(
            psp_reference(x, conv_w, conv_b, gamma, beta,
                          run_mean, run_var, mult))

        assert out.shape == (n, c_out, h * mult, w * mult), out.shape
        assert bool(jnp.all(jnp.isfinite(out)))
        max_err = float(jnp.max(jnp.abs(out - ref)))
        # bf16 MXU inputs with f32 accumulation -> small absolute error.
        assert bool(jnp.allclose(out, ref, rtol=2e-2, atol=2e-2)), max_err

    key = jax.random.PRNGKey(0)
    k1, k2 = jax.random.split(key)
    # Upsample-dominated case (C_in < C_out): conv runs after the upsample.
    run_case(k1, n=2, c_in=4, c_out=8, h=16, w=16, mult=8)
    # Conv-dominated case (C_in > C_out): conv runs at input resolution.
    run_case(k2, n=2, c_in=32, c_out=8, h=8, w=128, mult=2)
    print("KERNEL_OK")
</pallas_src>

<mosaic_0001>
module attributes {stable_mosaic.version = 11 : i64} {
  func.func @_psp_kernel(%arg0: i32, %arg1: memref<1x4x16x16xbf16, #tpu.memory_space<vmem>>, %arg2: memref<16x128xbf16, #tpu.memory_space<vmem>>, %arg3: memref<16x128xbf16, #tpu.memory_space<vmem>>, %arg4: memref<8x4xbf16, #tpu.memory_space<vmem>>, %arg5: memref<8x1xf32, #tpu.memory_space<vmem>>, %arg6: memref<1x8x16384xf32, #tpu.memory_space<vmem>>) attributes {dimension_semantics = [#tpu.dimension_semantics<parallel>], iteration_bounds = array<i64: 2>, scalar_prefetch = 0 : i64, scratch_operands = 0 : i64, tpu.core_type = #tpu.core_type<tc>, window_params = [{transform_indices = @transform_0, window_bounds = array<i64: 1, 4, 16, 16>}, {pipeline_mode = #tpu.pipeline_mode<synchronous>, transform_indices = @transform_1, window_bounds = array<i64: 16, 128>}, {pipeline_mode = #tpu.pipeline_mode<synchronous>, transform_indices = @transform_2, window_bounds = array<i64: 16, 128>}, {pipeline_mode = #tpu.pipeline_mode<synchronous>, transform_indices = @transform_3, window_bounds = array<i64: 8, 4>}, {pipeline_mode = #tpu.pipeline_mode<synchronous>, transform_indices = @transform_4, window_bounds = array<i64: 8, 1>}, {transform_indices = @transform_5, window_bounds = array<i64: 1, 8, 16384>}]} {
    %c0 = arith.constant 0 : index
    %c0_0 = arith.constant 0 : index
    %c0_1 = arith.constant 0 : index
    %c0_2 = arith.constant 0 : index
    %0 = vector.load %arg1[%c0, %c0_0, %c0_1, %c0_2] : memref<1x4x16x16xbf16, #tpu.memory_space<vmem>>, vector<1x4x16x16xbf16>
    %1 = vector.shape_cast %0 : vector<1x4x16x16xbf16> to vector<4x16x16xbf16>
    %c0_3 = arith.constant 0 : index
    %c0_4 = arith.constant 0 : index
    %2 = vector.load %arg4[%c0_3, %c0_4] : memref<8x4xbf16, #tpu.memory_space<vmem>>, vector<8x4xbf16>
    %c0_5 = arith.constant 0 : index
    %c0_6 = arith.constant 0 : index
    %3 = vector.load %arg2[%c0_5, %c0_6] : memref<16x128xbf16, #tpu.memory_space<vmem>>, vector<16x128xbf16>
    %c0_7 = arith.constant 0 : index
    %c0_8 = arith.constant 0 : index
    %4 = vector.load %arg3[%c0_7, %c0_8] : memref<16x128xbf16, #tpu.memory_space<vmem>>, vector<16x128xbf16>
    %5 = vector.shape_cast %1 : vector<4x16x16xbf16> to vector<64x16xbf16>
    %cst = arith.constant dense<0.000000e+00> : vector<64x128xf32>
    %6 = tpu.matmul %5, %4, %cst {dimension_numbers = #tpu.dot_dimension_numbers<[1], [0], [0], [1], [0, 0, 1, 1], [], []>} : vector<64x16xbf16>, vector<16x128xbf16>, vector<64x128xf32> -> vector<64x128xf32>
    %7 = arith.truncf %6 : vector<64x128xf32> to vector<64x128xbf16>
    %8 = vector.shape_cast %7 : vector<64x128xbf16> to vector<4x16x128xbf16>
    %9 = tpu.transpose %8, [0, 2, 1] : vector<4x16x128xbf16> -> vector<4x128x16xbf16>
    %10 = vector.shape_cast %9 : vector<4x128x16xbf16> to vector<512x16xbf16>
    %cst_9 = arith.constant dense<0.000000e+00> : vector<512x128xf32>
    %11 = tpu.matmul %10, %3, %cst_9 {dimension_numbers = #tpu.dot_dimension_numbers<[1], [0], [0], [1], [0, 0, 1, 1], [], []>} : vector<512x16xbf16>, vector<16x128xbf16>, vector<512x128xf32> -> vector<512x128xf32>
    %12 = arith.truncf %11 : vector<512x128xf32> to vector<512x128xbf16>
    %13 = vector.shape_cast %12 : vector<512x128xbf16> to vector<4x128x128xbf16>
    %14 = tpu.transpose %13, [0, 2, 1] : vector<4x128x128xbf16> -> vector<4x128x128xbf16>
    %15 = vector.shape_cast %14 : vector<4x128x128xbf16> to vector<4x16384xbf16>
    %cst_10 = arith.constant dense<0.000000e+00> : vector<8x16384xf32>
    %16 = tpu.matmul %2, %15, %cst_10 {dimension_numbers = #tpu.dot_dimension_numbers<[1], [0], [0], [1], [0, 0, 1, 1], [], []>} : vector<8x4xbf16>, vector<4x16384xbf16>, vector<8x16384xf32> -> vector<8x16384xf32>
    %c0_11 = arith.constant 0 : index
    %c0_12 = arith.constant 0 : index
    %17 = vector.load %arg5[%c0_11, %c0_12] : memref<8x1xf32, #tpu.memory_space<vmem>>, vector<8x1xf32>
    %18 = vector.broadcast %17 : vector<8x1xf32> to vector<8x16384xf32>
    %19 = arith.addf %16, %18 : vector<8x16384xf32>
    %cst_13 = arith.constant 0.000000e+00 : f32
    %20 = vector.broadcast %cst_13 : f32 to vector<8x16384xf32>
    %21 = arith.maximumf %19, %20 : vector<8x16384xf32>
    %c0_14 = arith.constant 0 : index
    %c0_15 = arith.constant 0 : index
    %c0_16 = arith.constant 0 : index
    %22 = vector.load %arg6[%c0_14, %c0_15, %c0_16] : memref<1x8x16384xf32, #tpu.memory_space<vmem>>, vector<1x8x16384xf32>
    %23 = vector.shape_cast %22 : vector<1x8x16384xf32> to vector<8x16384xf32>
    %24 = vector.shape_cast %21 : vector<8x16384xf32> to vector<1x8x16384xf32>
    tpu.vector_store %arg6[%c0_14, %c0_15, %c0_16], %24 {strides = array<i32>} : memref<1x8x16384xf32, #tpu.memory_space<vmem>>, vector<1x8x16384xf32>,
    return
  }
  func.func @transform_0(%arg0: i32) -> (i32, i32, i32, i32) {
    %c0_i32 = arith.constant 0 : i32
    %c0_i32_0 = arith.constant 0 : i32
    %c0_i32_1 = arith.constant 0 : i32
    %c0_i32_2 = arith.constant 0 : i32
    return %arg0, %c0_i32, %c0_i32_0, %c0_i32_1 : i32, i32, i32, i32
  }
  func.func @transform_1(%arg0: i32) -> (i32, i32) {
    %c0_i32 = arith.constant 0 : i32
    %c0_i32_0 = arith.constant 0 : i32
    %c0_i32_1 = arith.constant 0 : i32
    return %c0_i32, %c0_i32_0 : i32, i32
  }
  func.func @transform_2(%arg0: i32) -> (i32, i32) {
    %c0_i32 = arith.constant 0 : i32
    %c0_i32_0 = arith.constant 0 : i32
    %c0_i32_1 = arith.constant 0 : i32
    return %c0_i32, %c0_i32_0 : i32, i32
  }
  func.func @transform_3(%arg0: i32) -> (i32, i32) {
    %c0_i32 = arith.constant 0 : i32
    %c0_i32_0 = arith.constant 0 : i32
    %c0_i32_1 = arith.constant 0 : i32
    return %c0_i32, %c0_i32_0 : i32, i32
  }
  func.func @transform_4(%arg0: i32) -> (i32, i32) {
    %c0_i32 = arith.constant 0 : i32
    %c0_i32_0 = arith.constant 0 : i32
    %c0_i32_1 = arith.constant 0 : i32
    return %c0_i32, %c0_i32_0 : i32, i32
  }
  func.func @transform_5(%arg0: i32) -> (i32, i32, i32) {
    %c0_i32 = arith.constant 0 : i32
    %c0_i32_0 = arith.constant 0 : i32
    %c0_i32_1 = arith.constant 0 : i32
    return %arg0, %c0_i32, %c0_i32_0 : i32, i32, i32
  }
}

</mosaic_0001>

<bundles_post_ra>
// kernel: tpu_custom_call.1
= control target key start
LH: loop header
LB: loop body
LE: loop exit
PB: predicated region body
PF: predicated region fallthrough
CT: control target
= control target key end

     0   :  { %10 = vsyncpa [#allocation3], 0  ;;  %s7344_s0 = inlined_call_operand.hbm [shape: bf16[2,4,16,16], index: 0, kind: input, shape index: {}]   ;;  %s7345_s1 = inlined_call_operand.vmem [shape: bf16[16,128], index: 1, kind: input, shape index: {}]   ;;  %s7346_s2 = inlined_call_operand.vmem [shape: bf16[16,128], index: 2, kind: input, shape index: {}]   ;;  %s7347_s3 = inlined_call_operand.vmem [shape: bf16[8,4], index: 3, kind: input, shape index: {}]   ;;  %s7348_s4 = inlined_call_operand.vmem [shape: f32[8,1], index: 4, kind: input, shape index: {}]   ;;  %s7349_s5 = inlined_call_operand.hbm [shape: f32[2,8,16384], index: 5, kind: output, shape index: {}]  }
   0x1   :  { %12 = vsyncpa [#allocation3 + $0x1], 0 }
   0x2   :  { %13 = vsyncpa [#allocation4], 0 }
   0x3   :  { %15 = vsyncpa [#allocation4 + $0x1], 0  ;;  %s5960_s18 = smov 0   ;;  %s5962_s19 = smov 0  }
   0x4   :  { %s5964_s20 = smov 0   ;;  %s5966_s21 = smov 0  }
   0x5 LB: > { %s5981_s22 = sadd.s32 4294967295, %s5921_s21   ;;  %s5466_s23 = sadd.s32 4294967294, %s5921_s21   ;;  %s5921_s21 = sphi %s5966_s21, %s7362_s21   ;;  %s5917_s20 = sphi %s5964_s20, %s7361_s20   ;;  %s5913_s19 = sphi %s5962_s19, %s7360_s19   ;;  %s5909_s18 = sphi %s5960_s18, %s7359_s18  }
   0x6   : > { %s5985_s24 = sadd.s32 1, %s5921_s21   ;;  %s28_s25 = sadd.s32 1, %s5917_s20 }
   0x7   : > { %s25_s26 = ssub.s32 %s5921_s21, %s5985_s24  ;;  %p35_p0 = scmp.ne.s32.totalorder %s5917_s20, %s5913_s19 }
   0x8   : > { %p26_p1 = scmp.eq.s32.totalorder %s25_s26, 0  ;;  %p36_p2 = scmp.eq.s32.totalorder %s5921_s21, 0 }
   0x9   : > { %p41_p3 = scmp.ne.s32.totalorder %s5913_s19, %s5909_s18  ;;  %p42_p4 = scmp.eq.s32.totalorder %s5981_s22, 0 }
   0xa   : > { %s5997_s27 = scalar_select %p26_p1, %s5917_s20, %s28_s25  }
   0xb   : > { %p5999_p5 = por %p36_p2, %p35_p0  ;;  %p6003_p6 = por %p42_p4, %p41_p3 }
   0xc   : > { %p149_p7 = scmp.eq.s32.totalorder %s5981_s22, 1  ;;  %p155_p8 = scmp.eq.s32.totalorder %s5466_s23, 1 }
   0xd   : > { %p5778_p10 = scmp.lt.s32.totalorder %s5921_s21, 2  ;;  %s187_s7 = sand.u32 1, %s5917_s20  }
   0xe   : > { %p6010_p11 = por %p149_p7, %p35_p0  ;;  %p6014_p12 = por %p155_p8, %p41_p3 }
   0xf   : > { %s5650_s8 = sshll.u32 %s5921_s21, 9  ;;  %s5469_s9 = sshll.u32 %s187_s7, 5 }
  0x10   : > { %s7353_s30 = scalar_select %p6010_p11, 1, 0 }
  0x11   : > { %s7354_s6 = scalar_select %p6014_p12, 1, 0 }
  0x12   : > { %s6023_s12 = scalar_lea.hbm %s7344_s0, %s5650_s8  ;;  %s191_s13 = scalar_lea.vmem [#allocation2], %s5469_s9 }
  0x13   : > { %s198_s14 = sshll.u32 %s191_s13, 4  ;;  %p6027_p13 = pnand %p5778_p10, %p5999_p5  ;;  %s6031_s14 = int_to_ptr.vmem [resolvable:$true] %s198_s14 }
  0x14   : > { %s6033_s16 = scalar_lea.sflag [#allocation3], %s187_s7  ;;  %s5825_s17 = scalar_lea.hbm %s6023_s12, 512 }
  0x15   : > { %p5826_p0 = scmp.ne.s32.totalorder %s6023_s12, %s5825_s17  ;;  %p5827_p1 = pneg %p6027_p13 }
  0x16   : > { %s5830_s26 = scalar_lea.hbm %s7344_s0, 1024  ;;  %p5831_p4 = scmp.lt.u32.totalorder %s6023_s12, %s7344_s0 }
  0x17   : > { %p5828_p2 = pnand %p5827_p1, %p5826_p0  ;;  %p5832_p5 = scmp.lt.u32.totalorder %s5830_s26, %s5825_s17 }
  0x18   : > { %p5834_p8 = scmp.lt.u32.totalorder %s5825_s17, %s6023_s12 }
  0x19   : > { %p5829_p3 = pneg %p5828_p2  ;;  %p5833_p7 = por %p5832_p5, %p5831_p4 }
  0x1b   : > { %p5835_p10 = por %p5834_p8, %p5833_p7 }
  0x1d   : > { %p5836_p9 = pnand %p5835_p10, %p5829_p3 }
  0x1f   : > { %5839 = shalt.err (!%p5836_p9)
}
  0x20   : > { %s5840_s7 = scalar_lea.vmem %s6031_s14, 512  ;;  %s5923_s9 = smov [#allocation2]  }
  0x21   : > { %p5841_p0 = scmp.ne.s32.totalorder %s6031_s14, %s5840_s7  ;;  %s5845_s10 = sshll.u32 %s5923_s9, 4  ;;  %s5846_s10 = int_to_ptr.vmem [resolvable:$false] %s5845_s10 }
  0x22   : > { %s5847_s11 = scalar_lea.vmem %s5846_s10, 1024  ;;  %p5848_p11 = scmp.lt.s32.totalorder %s6031_s14, %s5846_s10 }
  0x23   : > { %p5843_p2 = pnand %p5841_p0, %p5827_p1  ;;  %p5849_p4 = scmp.lt.s32.totalorder %s5847_s11, %s5840_s7 }
  0x25   : > { %p5844_p12 = pneg %p5843_p2  ;;  %p5850_p5 = por %p5849_p4, %p5848_p11 }
  0x27   : > { %p5851_p7 = pnand %p5850_p5, %p5844_p12 }
  0x29   : > { %5854 = shalt.err (!%p5851_p7)
}
  0x2a   : > { %s5924_s13 = smov 64   ;;  %s5925_s17 = smov 4  }
  0x2b   : > { %5773 = dma.hbm_to_vmem [thread:$0]  (!%p6027_p13), %s6023_s12, 512, %s6031_s14, %s6033_s16, %s5924_s13, %s5924_s13, %s5925_s17  }
  0x2c   : > { %p5472_p9 = scmp.ge.s32.totalorder %s5921_s21, 1  ;;  %p206_p1 = scmp.lt.s32.totalorder %s5921_s21, 3 }
  0x2e   : > { %p207_p3 = pnand %p5472_p9, %p206_p1 }
  0x2f   : > { %s6064_s23 = sand.u32 (!%p207_p3), 1, %s5913_s19  }
  0x30   : > { %210 = sbr.rel (%p207_p3) target bundleno = 1350 (0x546), region = 40  ;;  %s5473_s25 = sshll.u32 (!%p207_p3), %s6064_s23, 5 }
  0x31   : > { %s213_s26 = scalar_lea.sflag (!%p207_p3), [#allocation3], %s6064_s23  ;;  %s216_s28 = scalar_lea.vmem (!%p207_p3), [#allocation2], %s5473_s25 }
  0x37   : > { %5900 = dma.done.wait (%p6003_p6), %s213_s26, 512  }
  0x38   : > { %5902 = vsyncadd (%p6003_p6), %s213_s26, 4294966784  ;;  %v5818_v0 = vld [vmem:[%s7346_s2] sm:$0xff]   ;;  %vm283_vm0 = vcmask 130048   ;;  %v5820_v2 = vld [vmem:[%s216_s28 + $0x8] sm:$0xff]   ;;  %v5926_v55 = vmov 0   ;;  %vm2116_vm1 = vcmask 1041408  }
  0x39   : > { %v5819_v1 = vld [vmem:[%s216_s28] sm:$0xff]   ;;  %5690 = vmatprep.subr.bf16.mxu0 %v5818_v0  ;;  %v5821_v3 = vld [vmem:[%s216_s28 + $0x10] sm:$0xff]   ;;  %v5822_v4 = vld [vmem:[%s216_s28 + $0x18] sm:$0xff]   ;;  %vm2112_vm2 = vcmask 31744   ;;  %s5474_s13 = sshll.u32 %s6064_s23, 10  ;;  %s5651_s25 = sshll.u32 %s5981_s22, 14 }
  0x3a   : > { %5691 = vmatpush3.bf16.msra.mxu0 %v5818_v0  ;;  %5692 = vmatprep.mubr.msk.bf16.mxu0 %vm283_vm0, %v5819_v1  ;;  %v5823_v5 = vld [vmem:[%s7345_s1] sm:$0xff]   ;;  %s6960_s17 = scalar_lea.vmem [#allocation5], %s5474_s13  ;;  %s7298_s12 = scalar_lea.hbm %s7349_s5, %s5651_s25 }
  0x3b   : > { %5700 = vmatprep.subr.bf16.mxu1 %v5823_v5  ;;  %s5396_s26 = sshll.u32 %s6960_s17, 4  ;;  %s5382_s22 = scalar_lea.sflag [#allocation4], %s6064_s23  ;;  %s7300_s26 = int_to_ptr.vmem [resolvable:$true] %s5396_s26 }
  0x3c   : > { %5701 = vmatpush3.bf16.msra.mxu1 %v5823_v5  ;;  %s5855_s29 = scalar_lea.vmem %s7300_s26, 16384  ;;  %p7356_p11 = scmp.ne.s32.totalorder %s7353_s30, 0 }
  0x3d   : > { %5693 = vmatmul.mubr.msk.bf16.vlgmr.msra.gmra.mrb[0].mxu0 %vm283_vm0, %v5820_v2  ;;  %p5856_p6 = scmp.ne.s32.totalorder %s7300_s26, %s5855_s29  ;;  %s5929_s14 = smov [#allocation5]  }
  0x3e   : > { %5696 = vmatprep.mubr.msk.bf16.mxu0 %vm283_vm0, %v5821_v3  ;;  %s5859_s16 = sshll.u32 %s5929_s14, 4  ;;  %s5860_s16 = int_to_ptr.vmem [resolvable:$false] %s5859_s16 }
  0x3f   : > { %p5857_p12 = pnand %p5856_p6, %p7356_p11  ;;  %s5861_s8 = scalar_lea.vmem %s5860_s16, 32768 }
  0x40   : > { %p5862_p8 = scmp.lt.s32.totalorder %s7300_s26, %s5860_s16  ;;  %p5863_p10 = scmp.lt.s32.totalorder %s5861_s8, %s5855_s29 }
  0x41   : > { %p5858_p13 = pneg %p5857_p12 }
  0x42   : > { %p5864_p0 = por %p5863_p10, %p5862_p8 }
  0x44   : > { %p5865_p2 = pnand %p5864_p0, %p5858_p13 }
  0x45   : > { %5697 = vmatmul.mubr.msk.bf16.gmra.mrb[4].mxu0 %vm283_vm0, %v5822_v4 }
  0x46   : > { %2533 = vmatprep.mubr.bf16.mxu0 %v5926_v55 }
 0x110   : > { %v5694_v6 = vpop.f32.mrb[0].mxu0 }
 0x111   : > { %v330_v7 = vpop.f32.mrb[1].mxu0 }
 0x112   : > { %v5695_v8 = vpop.f32.mrb[2].mxu0 }
 0x113   : > { %v362_v9 = vpack.c.bf16 %v5695_v8, %v5694_v6  ;;  %v333_v10 = vpop.f32.mrb[3].mxu0 }
 0x114   : > { %v361_v11 = vpack.c.bf16 %v333_v10, %v330_v7 }
 0x116   : > { %365 = vxpose.xlu0.c.b16.start.end [1/1] (short) %v361_v11, 128 }
 0x118   : > { %v5698_v12 = vpop.f32.mrb[4].mxu0 }
 0x119   : > { %v346_v13 = vpop.f32.mrb[5].mxu0 }
 0x11a   : > { %v5699_v14 = vpop.f32.mrb[6].mxu0 }
 0x11b   : > { %v364_v15 = vpack.c.bf16 %v5699_v14, %v5698_v12  ;;  %v349_v16 = vpop.f32.mrb[7].mxu0 }
 0x11c   : > { %v363_v17 = vpack.c.bf16 %v349_v16, %v346_v13 }
 0x11e   : > { %397 = vxpose.xlu1.c.b16.start.end [1/1] (short) %v363_v17, 128 }
 0x133   : > { %381 = vxpose.xlu0.c.b16.start.end [1/1] (short) %v362_v9, 128 }
 0x13b   : > { %413 = vxpose.xlu1.c.b16.start.end [1/1] (short) %v364_v15, 128 }
 0x17c   : > { %v373_v18 = vpop.trf.xlu0 }
 0x17d   : > { %5702 = vmatprep.mubr.msk.bf16.mxu1 %vm283_vm0, %v373_v18 }
 0x180   : > { %v374_v19 = vpop.trf.xlu0 }
 0x181   : > { %5703 = vmatmul.mubr.msk.bf16.vlgmr.msra.gmra.mrb[0].mxu1 %vm283_vm0, %v374_v19 }
 0x184   : > { %v375_v20 = vpop.trf.xlu0  ;;  %v405_v26 = vpop.trf.xlu1 }
 0x185   : > { %5706 = vmatprep.mubr.msk.bf16.mxu1 %vm283_vm0, %v375_v20 }
 0x188   : > { %v376_v21 = vpop.trf.xlu0  ;;  %v406_v29 = vpop.trf.xlu1 }
 0x189   : > { %5707 = vmatmul.mubr.msk.bf16.gmra.mrb[4].mxu1 %vm283_vm0, %v376_v21 }
 0x18c   : > { %v377_v22 = vpop.trf.xlu0  ;;  %v407_v31 = vpop.trf.xlu1 }
 0x18d   : > { %5710 = vmatprep.mubr.msk.bf16.mxu1 %vm283_vm0, %v377_v22 }
 0x190   : > { %v378_v23 = vpop.trf.xlu0  ;;  %v408_v34 = vpop.trf.xlu1 }
 0x191   : > { %5711 = vmatmul.mubr.msk.bf16.gmra.mrb[8].mxu1 %vm283_vm0, %v378_v23 }
 0x194   : > { %v379_v24 = vpop.trf.xlu0  ;;  %v409_v36 = vpop.trf.xlu1 }
 0x195   : > { %5714 = vmatprep.mubr.msk.bf16.mxu1 %vm283_vm0, %v379_v24 }
 0x198   : > { %v380_v25 = vpop.trf.xlu0  ;;  %v410_v39 = vpop.trf.xlu1 }
 0x199   : > { %5715 = vmatmul.mubr.msk.bf16.gmra.mrb[12].mxu1 %vm283_vm0, %v380_v25 }
 0x19c   : > { %v389_v27 = vpop.trf.xlu0  ;;  %v411_v40 = vpop.trf.xlu1 }
 0x19d   : > { %5718 = vmatprep.mubr.msk.bf16.mxu1 %vm283_vm0, %v389_v27 }
 0x1a0   : > { %v390_v28 = vpop.trf.xlu0  ;;  %v412_v41 = vpop.trf.xlu1 }
 0x1a1   : > { %5719 = vmatmul.mubr.msk.bf16.gmra.mrb[16].mxu1 %vm283_vm0, %v390_v28 }
 0x1a4   : > { %v391_v30 = vpop.trf.xlu0  ;;  %v421_v42 = vpop.trf.xlu1 }
 0x1a5   : > { %5722 = vmatprep.mubr.msk.bf16.mxu1 %vm283_vm0, %v391_v30 }
 0x1a8   : > { %v392_v32 = vpop.trf.xlu0  ;;  %v422_v43 = vpop.trf.xlu1 }
 0x1a9   : > { %5723 = vmatmul.mubr.msk.bf16.gmra.mrb[20].mxu1 %vm283_vm0, %v392_v32 }
 0x1ac   : > { %v393_v33 = vpop.trf.xlu0  ;;  %v423_v44 = vpop.trf.xlu1 }
 0x1ad   : > { %5726 = vmatprep.mubr.msk.bf16.mxu1 %vm283_vm0, %v393_v33 }
 0x1b0   : > { %v394_v35 = vpop.trf.xlu0  ;;  %v424_v45 = vpop.trf.xlu1 }
 0x1b1   : > { %5727 = vmatmul.mubr.msk.bf16.gmra.mrb[24].mxu1 %vm283_vm0, %v394_v35 }
 0x1b4   : > { %v395_v37 = vpop.trf.xlu0  ;;  %v425_v46 = vpop.trf.xlu1 }
 0x1b5   : > { %5730 = vmatprep.mubr.msk.bf16.mxu1 %vm283_vm0, %v395_v37 }
 0x1b8   : > { %v396_v38 = vpop.trf.xlu0  ;;  %v426_v47 = vpop.trf.xlu1 }
 0x1b9   : > { %5731 = vmatmul.mubr.msk.bf16.gmra.mrb[28].mxu1 %vm283_vm0, %v396_v38 }
 0x1ba   : > { %5734 = vmatprep.mubr.msk.bf16.mxu1 %vm283_vm0, %v405_v26 }
 0x1bc   : > { %v427_v48 = vpop.trf.xlu1 }
 0x1c0   : > { %v428_v49 = vpop.trf.xlu1 }
 0x1c1   : > { %5735 = vmatmul.mubr.msk.bf16.gmra.mrb[32].mxu1 %vm283_vm0, %v406_v29 }
 0x1c2   : > { %5738 = vmatprep.mubr.msk.bf16.mxu1 %vm283_vm0, %v407_v31 }
 0x1c9   : > { %5739 = vmatmul.mubr.msk.bf16.gmra.mrb[36].mxu1 %vm283_vm0, %v408_v34 }
 0x1ca   : > { %5742 = vmatprep.mubr.msk.bf16.mxu1 %vm283_vm0, %v409_v36 }
 0x1d1   : > { %5743 = vmatmul.mubr.msk.bf16.gmra.mrb[40].mxu1 %vm283_vm0, %v410_v39 }
 0x1d2   : > { %5746 = vmatprep.mubr.msk.bf16.mxu1 %vm283_vm0, %v411_v40 }
 0x1d9   : > { %5747 = vmatmul.mubr.msk.bf16.gmra.mrb[44].mxu1 %vm283_vm0, %v412_v41 }
 0x1da   : > { %5750 = vmatprep.mubr.msk.bf16.mxu1 %vm283_vm0, %v421_v42 }
 0x1e1   : > { %5751 = vmatmul.mubr.msk.bf16.gmra.mrb[48].mxu1 %vm283_vm0, %v422_v43 }
 0x1e2   : > { %5754 = vmatprep.mubr.msk.bf16.mxu1 %vm283_vm0, %v423_v44 }
 0x1e9   : > { %5755 = vmatmul.mubr.msk.bf16.gmra.mrb[52].mxu1 %vm283_vm0, %v424_v45 }
 0x1ea   : > { %5758 = vmatprep.mubr.msk.bf16.mxu1 %vm283_vm0, %v425_v46 }
 0x1f1   : > { %5759 = vmatmul.mubr.msk.bf16.gmra.mrb[56].mxu1 %vm283_vm0, %v426_v47 }
 0x1f2   : > { %5762 = vmatprep.mubr.msk.bf16.mxu1 %vm283_vm0, %v427_v48 }
 0x1f9   : > { %5763 = vmatmul.mubr.msk.bf16.gmra.mrb[60].mxu1 %vm283_vm0, %v428_v49 }
 0x1fa   : > { %3148 = vmatprep.mubr.bf16.mxu1 %v5926_v55 }
 0x254   : > { %v5704_v50 = vpop.f32.mrb[0].mxu1 }
 0x255   : > { %v565_v51 = vpop.f32.mrb[1].mxu1 }
 0x256   : > { %v5705_v52 = vpop.f32.mrb[2].mxu1 }
 0x257   : > { %v821_v53 = vpack.c.bf16 %v5705_v52, %v5704_v50  ;;  %v568_v54 = vpop.f32.mrb[3].mxu1 }
 0x258   : > { %v820_v56 = vpack.c.bf16 %v568_v54, %v565_v51 }
 0x25a   : > { %852 = vxpose.xlu0.c.b16.start [1/8] %v820_v56, 128 }
 0x25c   : > { %v5708_v57 = vpop.f32.mrb[4].mxu1 }
 0x25d   : > { %v581_v58 = vpop.f32.mrb[5].mxu1 }
 0x25e   : > { %853 = vxpose.xlu0.c.b16.cont [2/8] %v821_v53, 128  ;;  %v5709_v59 = vpop.f32.mrb[6].mxu1 }
 0x25f   : > { %v823_v60 = vpack.c.bf16 %v5709_v59, %v5708_v57  ;;  %v584_v61 = vpop.f32.mrb[7].mxu1 }
 0x260   : > { %v822_v62 = vpack.c.bf16 %v584_v61, %v581_v58 }
 0x262   : > { %854 = vxpose.xlu0.c.b16.cont [3/8] %v822_v62, 128 }
 0x264   : > { %v5712_v63 = vpop.f32.mrb[8].mxu1 }
 0x265   : > { %v597_v0 = vpop.f32.mrb[9].mxu1 }
 0x266   : > { %855 = vxpose.xlu0.c.b16.cont [4/8] %v823_v60, 128  ;;  %v5713_v1 = vpop.f32.mrb[10].mxu1 }
 0x267   : > { %v825_v2 = vpack.c.bf16 %v5713_v1, %v5712_v63  ;;  %v600_v3 = vpop.f32.mrb[11].mxu1 }
 0x268   : > { %v824_v4 = vpack.c.bf16 %v600_v3, %v597_v0 }
 0x26a   : > { %856 = vxpose.xlu0.c.b16.cont [5/8] %v824_v4, 128 }
 0x26c   : > { %v5716_v5 = vpop.f32.mrb[12].mxu1 }
 0x26d   : > { %v613_v6 = vpop.f32.mrb[13].mxu1 }
 0x26e   : > { %857 = vxpose.xlu0.c.b16.cont [6/8] %v825_v2, 128  ;;  %v5717_v7 = vpop.f32.mrb[14].mxu1 }
 0x26f   : > { %v827_v8 = vpack.c.bf16 %v5717_v7, %v5716_v5  ;;  %v616_v9 = vpop.f32.mrb[15].mxu1 }
 0x270   : > { %v826_v10 = vpack.c.bf16 %v616_v9, %v613_v6 }
 0x272   : > { %858 = vxpose.xlu0.c.b16.cont [7/8] %v826_v10, 128 }
 0x274   : > { %v5720_v11 = vpop.f32.mrb[16].mxu1 }
 0x275   : > { %v629_v12 = vpop.f32.mrb[17].mxu1 }
 0x276   : > { %859 = vxpose.xlu0.c.b16.end [8/8] %v827_v8, 128  ;;  %v5721_v13 = vpop.f32.mrb[18].mxu1 }
 0x277   : > { %v829_v14 = vpack.c.bf16 %v5721_v13, %v5720_v11  ;;  %v632_v15 = vpop.f32.mrb[19].mxu1 }
 0x278   : > { %v828_v16 = vpack.c.bf16 %v632_v15, %v629_v12 }
 0x27a   : > { %868 = vxpose.xlu1.c.b16.start [1/8] %v828_v16, 128 }
 0x27c   : > { %v5724_v17 = vpop.f32.mrb[20].mxu1 }
 0x27d   : > { %v645_v18 = vpop.f32.mrb[21].mxu1 }
 0x27e   : > { %v5725_v19 = vpop.f32.mrb[22].mxu1  ;;  %869 = vxpose.xlu1.c.b16.cont [2/8] %v829_v14, 128 }
 0x27f   : > { %v831_v20 = vpack.c.bf16 %v5725_v19, %v5724_v17  ;;  %v648_v21 = vpop.f32.mrb[23].mxu1 }
 0x280   : > { %v830_v22 = vpack.c.bf16 %v648_v21, %v645_v18 }
 0x282   : > { %870 = vxpose.xlu1.c.b16.cont [3/8] %v830_v22, 128 }
 0x284   : > { %v5728_v23 = vpop.f32.mrb[24].mxu1 }
 0x285   : > { %v661_v24 = vpop.f32.mrb[25].mxu1 }
 0x286   : > { %v5729_v25 = vpop.f32.mrb[26].mxu1  ;;  %871 = vxpose.xlu1.c.b16.cont [4/8] %v831_v20, 128 }
 0x287   : > { %v833_v26 = vpack.c.bf16 %v5729_v25, %v5728_v23  ;;  %v664_v27 = vpop.f32.mrb[27].mxu1 }
 0x288   : > { %v832_v28 = vpack.c.bf16 %v664_v27, %v661_v24 }
 0x28a   : > { %872 = vxpose.xlu1.c.b16.cont [5/8] %v832_v28, 128 }
 0x28c   : > { %v5732_v29 = vpop.f32.mrb[28].mxu1 }
 0x28d   : > { %v677_v30 = vpop.f32.mrb[29].mxu1 }
 0x28e   : > { %v5733_v31 = vpop.f32.mrb[30].mxu1  ;;  %873 = vxpose.xlu1.c.b16.cont [6/8] %v833_v26, 128 }
 0x28f   : > { %v835_v32 = vpack.c.bf16 %v5733_v31, %v5732_v29  ;;  %v680_v33 = vpop.f32.mrb[31].mxu1 }
 0x290   : > { %v834_v34 = vpack.c.bf16 %v680_v33, %v677_v30 }
 0x292   : > { %874 = vxpose.xlu1.c.b16.cont [7/8] %v834_v34, 128 }
 0x294   : > { %v5736_v35 = vpop.f32.mrb[32].mxu1 }
 0x295   : > { %v693_v36 = vpop.f32.mrb[33].mxu1 }
 0x296   : > { %875 = vxpose.xlu1.c.b16.end [8/8] %v835_v32, 128  ;;  %v5737_v37 = vpop.f32.mrb[34].mxu1 }
 0x297   : > { %v837_v38 = vpack.c.bf16 %v5737_v37, %v5736_v35  ;;  %v696_v39 = vpop.f32.mrb[35].mxu1 }
 0x298   : > { %v836_v40 = vpack.c.bf16 %v696_v39, %v693_v36 }
 0x29a   : > { %884 = vxpose.xlu0.c.b16.start [1/8] %v836_v40, 128 }
 0x29c   : > { %v5740_v41 = vpop.f32.mrb[36].mxu1 }
 0x29d   : > { %v709_v42 = vpop.f32.mrb[37].mxu1 }
 0x29e   : > { %885 = vxpose.xlu0.c.b16.cont [2/8] %v837_v38, 128  ;;  %v5741_v43 = vpop.f32.mrb[38].mxu1 }
 0x29f   : > { %v839_v44 = vpack.c.bf16 %v5741_v43, %v5740_v41  ;;  %v712_v45 = vpop.f32.mrb[39].mxu1 }
 0x2a0   : > { %v838_v46 = vpack.c.bf16 %v712_v45, %v709_v42 }
 0x2a2   : > { %886 = vxpose.xlu0.c.b16.cont [3/8] %v838_v46, 128 }
 0x2a4   : > { %v5744_v47 = vpop.f32.mrb[40].mxu1 }
 0x2a5   : > { %v725_v48 = vpop.f32.mrb[41].mxu1 }
 0x2a6   : > { %887 = vxpose.xlu0.c.b16.cont [4/8] %v839_v44, 128  ;;  %v5745_v49 = vpop.f32.mrb[42].mxu1 }
 0x2a7   : > { %v841_v50 = vpack.c.bf16 %v5745_v49, %v5744_v47  ;;  %v728_v51 = vpop.f32.mrb[43].mxu1 }
 0x2a8   : > { %v840_v52 = vpack.c.bf16 %v728_v51, %v725_v48 }
 0x2aa   : > { %888 = vxpose.xlu0.c.b16.cont [5/8] %v840_v52, 128 }
 0x2ac   : > { %v5748_v53 = vpop.f32.mrb[44].mxu1 }
 0x2ad   : > { %v741_v54 = vpop.f32.mrb[45].mxu1 }
 0x2ae   : > { %889 = vxpose.xlu0.c.b16.cont [6/8] %v841_v50, 128  ;;  %v5749_v56 = vpop.f32.mrb[46].mxu1 }
 0x2af   : > { %v843_v57 = vpack.c.bf16 %v5749_v56, %v5748_v53  ;;  %v744_v58 = vpop.f32.mrb[47].mxu1 }
 0x2b0   : > { %v842_v59 = vpack.c.bf16 %v744_v58, %v741_v54 }
 0x2b2   : > { %890 = vxpose.xlu0.c.b16.cont [7/8] %v842_v59, 128  ;;  %v1054_v59 = vlaneseq }
 0x2b4   : > { %v5752_v60 = vpop.f32.mrb[48].mxu1 }
 0x2b5   : > { %v757_v61 = vpop.f32.mrb[49].mxu1 }
 0x2b6   : > { %891 = vxpose.xlu0.c.b16.end [8/8] %v843_v57, 128  ;;  %v5753_v62 = vpop.f32.mrb[50].mxu1  ;;  %v5927_v57 = vmov 1983009808  }
 0x2b7   : > { %v845_v63 = vpack.c.bf16 %v5753_v62, %v5752_v60  ;;  %v760_v0 = vpop.f32.mrb[51].mxu1  ;;  %v1052_v58 = vunpack.c.l.s4 %v5927_v57 }
 0x2b8   : > { %v844_v1 = vpack.c.bf16 %v760_v0, %v757_v61  ;;  %v1055_v61 = vshrl.u32 %v1054_v59, 7 }
 0x2b9   : > { %v1053_v60 = vunpack.c.0.s8 %v1052_v58  ;;  %v6208_v58 = vld [vmem:[%s7347_s3] sm:$0xf] }
 0x2ba   : > { %900 = vxpose.xlu1.c.b16.start [1/8] %v844_v1, 128 }
 0x2bc   : > { %v5756_v2 = vpop.f32.mrb[52].mxu1 }
 0x2bd   : > { %v773_v3 = vpop.f32.mrb[53].mxu1 }
 0x2be   : > { %901 = vxpose.xlu1.c.b16.cont [2/8] %v845_v63, 128  ;;  %v5757_v4 = vpop.f32.mrb[54].mxu1  ;;  %v5928_v63 = vmov 1934713408  }
 0x2bf   : > { %v847_v5 = vpack.c.bf16 %v5757_v4, %v5756_v2  ;;  %v776_v6 = vpop.f32.mrb[55].mxu1  ;;  %5817 = vset.pattern.permute.xlu0 %v5926_v55  ;;  %v1083_v0 = vunpack.c.l.s4 %v5928_v63 }
 0x2c0   : > { %v846_v7 = vpack.c.bf16 %v776_v6, %v773_v3  ;;  %v860_v19 = vpop.trf.xlu0  ;;  %v6145_v3 = vsub.s32 %v1053_v60, %v1055_v61 }
 0x2c1   : > { %v920_v1 = vshrl.u32 %v860_v19, 16 }
 0x2c2   : > { %902 = vxpose.xlu1.c.b16.cont [3/8] %v846_v7, 128  ;;  %v1084_v7 = vunpack.c.0.s8 %v1083_v0 }
 0x2c4   : > { %v5760_v8 = vpop.f32.mrb[56].mxu1  ;;  %v6117_v21 = vpop.trf.xlu0 }
 0x2c5   : > { %v789_v9 = vpop.f32.mrb[57].mxu1 }
 0x2c6   : > { %903 = vxpose.xlu1.c.b16.cont [4/8] %v847_v5, 128  ;;  %v5761_v10 = vpop.f32.mrb[58].mxu1 }
 0x2c7   : > { %v849_v11 = vpack.c.bf16 %v5761_v10, %v5760_v8  ;;  %v792_v12 = vpop.f32.mrb[59].mxu1 }
 0x2c8   : > { %v848_v13 = vpack.c.bf16 %v792_v12, %v789_v9  ;;  %v6119_v22 = vpop.trf.xlu0 }
 0x2ca   : > { %904 = vxpose.xlu1.c.b16.cont [5/8] %v848_v13, 128 }
 0x2cc   : > { %v5764_v14 = vpop.f32.mrb[60].mxu1  ;;  %v863_v24 = vpop.trf.xlu0 }
 0x2cd   : > { %v805_v15 = vpop.f32.mrb[61].mxu1  ;;  %v974_v28 = vshrl.u32 %v863_v24, 16 }
 0x2ce   : > { %905 = vxpose.xlu1.c.b16.cont [6/8] %v849_v11, 128  ;;  %v5765_v16 = vpop.f32.mrb[62].mxu1 }
 0x2cf   : > { %v851_v17 = vpack.c.bf16 %v5765_v16, %v5764_v14  ;;  %v808_v18 = vpop.f32.mrb[63].mxu1 }
 0x2d0   : > { %v850_v20 = vpack.c.bf16 %v808_v18, %v805_v15  ;;  %v864_v26 = vpop.trf.xlu0  ;;  %v2106_v15 = vld [vmem:[%s7348_s4] sm:$0xff]  ;;  %v6166_v18 = vsub.s32 %v1084_v7, %v1055_v61 }
 0x2d1   : > { %v990_v33 = vshrl.u32 %v864_v26, 16  ;;  %2109 = vperm.xlu0 %5817, %v2106_v15  }
 0x2d2   : > { %906 = vxpose.xlu1.c.b16.cont [7/8] %v850_v20, 128 }
 0x2d4   : > { %v865_v31 = vpop.trf.xlu0 }
 0x2d5   : > { %v1006_v40 = vshrl.u32 %v865_v31, 16 }
 0x2d6   : > { %907 = vxpose.xlu1.c.b16.end [8/8] %v851_v17, 128 }
 0x2d8   : > { %v866_v39 = vpop.trf.xlu0 }
 0x2d9   : > { %v1022_v44 = vshrl.u32 %v866_v39, 16 }
 0x2dc   : > { %v867_v49 = vpop.trf.xlu0 }
 0x2dd   : > { %v1038_v51 = vshrl.u32 %v867_v49, 16 }
 0x2e0   : > { %v876_v23 = vpop.trf.xlu1 }
 0x2e1   : > { %v921_v2 = vshrl.u32 %v876_v23, 16  ;;  %v6147_v4 = vpack.i.b16 %v876_v23, %v860_v19  ;;  %v942_v19 = vshrl.u32 %v6117_v21, 16 }
 0x2e3   : > { %v6151_v11 = vpack.i.b16 %v921_v2, %v920_v1  ;;  %v6155_v12 = vrot.slane %v6147_v4, %v6145_v3 }
 0x2e4   : > { %v6121_v25 = vpop.trf.xlu1 }
 0x2e5   : > { %v943_v20 = vshrl.u32 %v6121_v25, 16 }
 0x2e8   : > { %v6123_v27 = vpop.trf.xlu1 }
 0x2ec   : > { %v879_v29 = vpop.trf.xlu1 }
 0x2ed   : > { %v6125_v30 = vpack.i.b16 %v879_v29, %v863_v24  ;;  %v975_v32 = vshrl.u32 %v879_v29, 16  ;;  %v1123_v24 = vrot.slane %v6151_v11, %v6145_v3 }
 0x2ef   : > { %v6127_v34 = vpack.i.b16 %v975_v32, %v974_v28 }
 0x2f0   : > { %v880_v35 = vpop.trf.xlu1 }
 0x2f1   : > { %v6129_v36 = vpack.i.b16 %v880_v35, %v864_v26  ;;  %v991_v37 = vshrl.u32 %v880_v35, 16 }
 0x2f3   : > { %v6131_v38 = vpack.i.b16 %v991_v37, %v990_v33 }
 0x2f4   : > { %v881_v41 = vpop.trf.xlu1 }
 0x2f5   : > { %v6133_v42 = vpack.i.b16 %v881_v41, %v865_v31  ;;  %v1007_v43 = vshrl.u32 %v881_v41, 16  ;;  %v6189_v41 = vpack.i.b16 %v6121_v25, %v6117_v21  ;;  %v958_v21 = vshrl.u32 %v6119_v22, 16 }
 0x2f6   : > { %v959_v25 = vshrl.u32 %v6123_v27, 16 }
 0x2f7   : > { %v6135_v45 = vpack.i.b16 %v1007_v43, %v1006_v40  ;;  %v6185_v40 = vpack.i.b16 %v943_v20, %v942_v19 }
 0x2f8   : > { %v882_v46 = vpop.trf.xlu1  ;;  %v960_v63 = vpack.i.b16 %v959_v25, %v958_v21 }
 0x2f9   : > { %v6137_v47 = vpack.i.b16 %v882_v46, %v866_v39  ;;  %v1023_v48 = vshrl.u32 %v882_v46, 16  ;;  %v6183_v39 = vpack.i.b16 %v5926_v55, %v5926_v55 }
 0x2fb   : > { %v6139_v50 = vpack.i.b16 %v1023_v48, %v1022_v44 }
 0x2fc   : > { %v883_v52 = vpop.trf.xlu1 }
 0x2fd   : > { %v6141_v53 = vpack.i.b16 %v883_v52, %v867_v49  ;;  %v1039_v54 = vshrl.u32 %v883_v52, 16  ;;  %v1248_v52 = vcombine.high %v6185_v40, %v6183_v39 }
 0x2ff   : > { %v6143_v56 = vpack.i.b16 %v1039_v54, %v1038_v51  ;;  %v1182_v54 = vcombine.high %v6189_v41, %v6183_v39 }
 0x300   : > { %v892_v62 = vpop.trf.xlu0 }
 0x301   : > { %v928_v5 = vshrl.u32 %v892_v62, 16  ;;  %v6224_v1 = vrot.slane %v1182_v54, %v6145_v3 }
 0x304   : > { %v893_v10 = vpop.trf.xlu0 }
 0x305   : > { %v950_v16 = vshrl.u32 %v893_v10, 16 }
 0x308   : > { %v894_v33 = vpop.trf.xlu0 }
 0x309   : > { %v966_v46 = vshrl.u32 %v894_v33, 16 }
 0x30c   : > { %v895_v54 = vpop.trf.xlu0 }
 0x320   : > { %v908_v6 = vpop.trf.xlu1 }
 0x321   : > { %v6149_v8 = vpack.i.b16 %v908_v6, %v892_v62  ;;  %v929_v9 = vshrl.u32 %v908_v6, 16  ;;  %v6218_v62 = vrot.slane %v1248_v52, %v6145_v3 }
 0x323   : > { %v6157_v13 = vpack.i.b16 %v929_v9, %v928_v5  ;;  %v6161_v14 = vrot.slane %v6149_v8, %v6145_v3  ;;  %v1065_v52 = vcombine.high %v6149_v8, %v6183_v39  ;;  %v1050_v8 = vcombine.high %v6147_v4, %v6183_v39 }
 0x324   : > { %v909_v17 = vpop.trf.xlu1 }
 0x325   : > { %v1080_v23 = vcombine.low %v6155_v12, %v6161_v14  ;;  %v1138_v26 = vrot.slane %v6157_v13, %v6145_v3  ;;  %v951_v28 = vshrl.u32 %v909_v17, 16  ;;  %v6176_v31 = vpack.i.b16 %v909_v17, %v893_v10 }
 0x326   : > { %v956_v10 = vpack.i.b16 %v6123_v27, %v6119_v22  ;;  %v1081_v17 = vcombine.high %v6155_v12, %v6161_v14  ;;  %v1131_v25 = vcombine.high %v6157_v13, %v6183_v39  ;;  %v1116_v13 = vcombine.high %v6151_v11, %v6183_v39 }
 0x327   : > { %v1146_v29 = vcombine.low %v1123_v24, %v1138_v26  ;;  %v6178_v32 = vpack.i.b16 %v951_v28, %v950_v16  ;;  %v1088_v37 = vrot.slane %v1080_v23, %v6166_v18  ;;  %v1197_v49 = vcombine.high %v6176_v31, %v6183_v39 }
 0x328   : > { %v910_v35 = vpop.trf.xlu1  ;;  %v1147_v2 = vcombine.high %v1123_v24, %v1138_v26  ;;  %v1387_v16 = vrot.slane %v960_v63, %v6145_v3  ;;  %v1321_v22 = vrot.slane %v956_v10, %v6145_v3  ;;  %v1095_v12 = vrot.slane %v1081_v17, %v6166_v18 }
 0x329   : > { %v1154_v43 = vrot.slane %v1146_v29, %v6166_v18  ;;  %v1263_v44 = vcombine.high %v6178_v32, %v6183_v39  ;;  %v967_v48 = vshrl.u32 %v910_v35, 16  ;;  %v2118_v51 = vsel %vm2116_vm1, %v1088_v37, 0 }
 0x32a   : > { %v6214_v61 = vrot.slane %v1197_v49, %v6145_v3  ;;  %v1112_v0 = vcombine.high %v1088_v37, %v5926_v55  ;;  %v964_v5 = vpack.i.b16 %v910_v35, %v894_v33  ;;  %v1161_v20 = vrot.slane %v1147_v2, %v6166_v18 }
 0x32b   : > { %5517 = vmatprep.subr.msk.bf16.mxu0 %vm2116_vm1, %v1154_v43  ;;  %v1178_v57 = vcombine.high %v1154_v43, %v5926_v55  ;;  %v6211_v59 = vrot.slane %v1263_v44, %v6145_v3  ;;  %v968_v60 = vpack.i.b16 %v967_v48, %v966_v46  ;;  %v2130_v35 = vsel %vm2116_vm1, %v1095_v12, 0 }
 0x32c   : > { %2502 = vmatpush1.bf16.msra.mxu0 %v2118_v51  ;;  %v2124_v9 = vsel %vm2116_vm1, %v1112_v0, 0  ;;  %v1229_v15 = vcombine.high %v6224_v1, %v6214_v61  ;;  %v6239_v19 = vrot.slane %v964_v5, %v6145_v3  ;;  %v1179_v48 = vcombine.high %v1161_v20, %v5926_v55 }
 0x32d   : > { %5519 = vmatprep.subr.msk.bf16.mxu0 %vm2116_vm1, %v1178_v57  ;;  %v1295_v6 = vcombine.high %v6218_v62, %v6211_v59  ;;  %v1402_v7 = vrot.slane %v968_v60, %v6145_v3  ;;  %v1395_v46 = vcombine.high %v968_v60, %v6183_v39  ;;  %v1380_v49 = vcombine.high %v960_v63, %v6183_v39  ;;  %v911_v57 = vpop.trf.xlu1 }
 0x32e   : > { %v6248_v27 = vrot.slane %v1229_v15, %v6166_v18  ;;  %v1344_v14 = vcombine.low %v1321_v22, %v6239_v19  ;;  %v1329_v21 = vcombine.high %v964_v5, %v6183_v39  ;;  %v1314_v0 = vcombine.high %v956_v10, %v6183_v39 }
 0x32f   : > { %5518 = vmatmul.mubr.msk.bf16.vlgmr.msra.gmra.mrb[8].mxu0 %vm2112_vm2, %v6208_v58  ;;  %v1410_v23 = vcombine.low %v1387_v16, %v1402_v7  ;;  %v6243_v24 = vrot.slane %v1295_v6, %v6166_v18  ;;  %v1411_v37 = vcombine.high %v1387_v16, %v1402_v7  ;;  %v1409_v2 = vrot.slane %v1395_v46, %v6145_v3 }
 0x330   : > { %2574 = vmatprep.mubr.bf16.mxu0 %v5926_v55  ;;  %2543 = vmatpush1.bf16.msra.mxu0 %v2124_v9  ;;  %v1247_v28 = vcombine.high %v6248_v27, %v5926_v55  ;;  %v6268_v44 = vrot.slane %v1344_v14, %v6166_v18  ;;  %v1394_v5 = vrot.slane %v1380_v49, %v6145_v3  ;;  %v982_v9 = vshrl.u32 %v895_v54, 16 }
 0x331   : > { %5521 = vmatprep.subr.msk.bf16.mxu0 %vm2116_vm1, %v1161_v20  ;;  %v1313_v26 = vcombine.high %v6243_v24, %v5926_v55  ;;  %v6261_v29 = vrot.slane %v1410_v23, %v6166_v18  ;;  %v6286_v63 = vrot.slane %v1411_v37, %v6166_v18  ;;  %v6302_v7 = vrot.slane %v1065_v52, %v6145_v3 }
 0x332   : > { %v2208_v33 = vsel %vm2116_vm1, %v1247_v28, 0  ;;  %v1376_v51 = vcombine.high %v6268_v44, %v5926_v55  ;;  %v1343_v4 = vrot.slane %v1329_v21, %v6145_v3  ;;  %v983_v10 = vshrl.u32 %v911_v57, 16 }
 0x333   : > { %5547 = vmatprep.subr.msk.bf16.mxu1 %vm2116_vm1, %v1313_v26  ;;  %v1442_v43 = vcombine.high %v6261_v29, %v5926_v55  ;;  %v1443_v6 = vcombine.high %v6286_v63, %v5926_v55  ;;  %v1145_v15 = vrot.slane %v1131_v25, %v6145_v3  ;;  %v1345_v16 = vcombine.high %v1321_v22, %v6239_v19 }
 0x334   : > { %3117 = vmatpush1.bf16.msra.mxu1 %v2208_v33  ;;  %v2220_v60 = vsel %vm2116_vm1, %v1376_v51, 0  ;;  %v6309_v11 = vrot.slane %v1050_v8, %v6145_v3  ;;  %v1328_v17 = vrot.slane %v1314_v0, %v6145_v3  ;;  %v1426_v20 = vcombine.low %v1394_v5, %v1409_v2 }
 0x335   : > { %5551 = vmatprep.subr.msk.bf16.mxu1 %vm2116_vm1, %v1442_v43  ;;  %v1130_v23 = vrot.slane %v1116_v13, %v6145_v3  ;;  %v6315_v14 = vpack.i.b16 %v983_v10, %v982_v9  ;;  %v1427_v22 = vcombine.high %v1394_v5, %v1409_v2  ;;  %v1113_v28 = vcombine.high %v1095_v12, %v5926_v55 }
 0x336   : > { %v1360_v26 = vcombine.low %v1328_v17, %v1343_v4  ;;  %v1096_v19 = vcombine.low %v6309_v11, %v6302_v7  ;;  %v6322_v33 = vrot.slane %v1345_v16, %v6166_v18  ;;  %v6325_v37 = vrot.slane %v1426_v20, %v6166_v18 }
 0x337   : > { %5520 = vmatmul.mubr.msk.bf16.vlgmr.msra.gmra.mrb[12].mxu0 %vm2112_vm2, %v6208_v58  ;;  %5548 = vmatmul.mubr.msk.bf16.vlgmr.msra.gmra.mrb[64].mxu1 %vm2112_vm2, %v6208_v58  ;;  %v2136_v43 = vsel %vm2116_vm1, %v1113_v28, 0  ;;  %v1361_v49 = vcombine.high %v1328_v17, %v1343_v4  ;;  %v6331_v51 = vpack.i.b16 %v911_v57, %v895_v54  ;;  %v1534_v21 = vrot.slane %v6315_v14, %v6145_v3 }
 0x338   : > { %2615 = vmatprep.mubr.bf16.mxu0 %v5926_v55  ;;  %2584 = vmatpush1.bf16.msra.mxu0 %v2130_v35  ;;  %v1162_v35 = vcombine.low %v1130_v23, %v1145_v15  ;;  %v1377_v46 = vcombine.high %v6322_v33, %v5926_v55  ;;  %v1104_v12 = vrot.slane %v1096_v19, %v6166_v18 }
 0x339   : > { %5523 = vmatprep.subr.msk.bf16.mxu0 %vm2116_vm1, %v1179_v48  ;;  %3230 = vmatprep.mubr.bf16.mxu1 %v5926_v55  ;;  %v6335_v52 = vrot.slane %v1360_v26, %v6166_v18  ;;  %v6344_v8 = vrot.slane %v1427_v22, %v6166_v18  ;;  %v1519_v57 = vrot.slane %v6127_v34, %v6145_v3 }
 0x33a   : > { %3199 = vmatpush1.bf16.msra.mxu1 %v2220_v60  ;;  %v1170_v48 = vrot.slane %v1162_v35, %v6166_v18  ;;  %v2232_v25 = vsel %vm2116_vm1, %v1377_v46, 0  ;;  %v1444_v60 = vcombine.high %v6325_v37, %v5926_v55  ;;  %v2142_v0 = vsel %vm2116_vm1, %v1104_v12, 0 }
 0x33b   : > { %5555 = vmatprep.subr.msk.bf16.mxu1 %vm2116_vm1, %v1443_v6  ;;  %v1378_v54 = vcombine.high %v6335_v52, %v5926_v55  ;;  %v1468_v13 = vrot.slane %v6331_v51, %v6145_v3  ;;  %v1542_v5 = vcombine.low %v1519_v57, %v1534_v21  ;;  %v1445_v4 = vcombine.high %v6344_v8, %v5926_v55 }
 0x33c   : > { %v1180_v2 = vcombine.high %v1170_v48, %v5926_v55  ;;  %v6365_v9 = vrot.slane %v1361_v49, %v6166_v18  ;;  %v1453_v10 = vrot.slane %v6125_v30, %v6145_v3  ;;  %v1114_v16 = vcombine.high %v1104_v12, %v5926_v55 }
 0x33d   : > { %v2244_v6 = vsel %vm2116_vm1, %v1378_v54, 0  ;;  %v1163_v17 = vcombine.high %v1130_v23, %v1145_v15  ;;  %v6375_v19 = vrot.slane %v1542_v5, %v6166_v18  ;;  %v1097_v35 = vcombine.high %v6309_v11, %v6302_v7 }
 0x33e   : > { %v1476_v20 = vcombine.low %v1453_v10, %v1468_v13  ;;  %v1379_v26 = vcombine.high %v6365_v9, %v5926_v55  ;;  %v2148_v22 = vsel %vm2116_vm1, %v1114_v16, 0  ;;  %v1527_v15 = vcombine.high %v6315_v14, %v6183_v39 }
 0x33f   : > { %5522 = vmatmul.mubr.msk.bf16.vlgmr.msra.gmra.mrb[16].mxu0 %vm2112_vm2, %v6208_v58  ;;  %5552 = vmatmul.mubr.msk.bf16.vlgmr.msra.gmra.mrb[68].mxu1 %vm2112_vm2, %v6208_v58  ;;  %v1177_v28 = vrot.slane %v1163_v17, %v6166_v18  ;;  %v1543_v23 = vcombine.high %v1519_v57, %v1534_v21  ;;  %v1574_v46 = vcombine.high %v6375_v19, %v5926_v55 }
 0x340   : > { %2656 = vmatprep.mubr.bf16.mxu0 %v5926_v55  ;;  %3312 = vmatprep.mubr.bf16.mxu1 %v5926_v55  ;;  %v1512_v7 = vcombine.high %v6127_v34, %v6183_v39  ;;  %v1111_v11 = vrot.slane %v1097_v35, %v6166_v18  ;;  %v1294_v14 = vcombine.low %v6218_v62, %v6211_v59 }
 0x341   : > { %2625 = vmatpush1.bf16.msra.mxu0 %v2136_v43  ;;  %3281 = vmatpush1.bf16.msra.mxu1 %v2232_v25  ;;  %v2256_v43 = vsel %vm2116_vm1, %v1379_v26, 0  ;;  %v1461_v49 = vcombine.high %v6331_v51, %v6183_v39  ;;  %v1228_v12 = vcombine.low %v6224_v1, %v6214_v61  ;;  %v1477_v21 = vcombine.high %v1453_v10, %v1468_v13  ;;  %v912_v10 = vpop.trf.xlu1 }
 0x342   : > { %5525 = vmatprep.subr.msk.bf16.mxu0 %vm2116_vm1, %v1170_v48  ;;  %5559 = vmatprep.subr.msk.bf16.mxu1 %vm2116_vm1, %v1444_v60  ;;  %v6393_v48 = vrot.slane %v1476_v20, %v6166_v18  ;;  %v1541_v25 = vrot.slane %v1527_v15, %v6145_v3  ;;  %v6410_v34 = vrot.slane %v1543_v23, %v6166_v18  ;;  %v999_v15 = vshrl.u32 %v912_v10, 16 }
 0x343   : > { %v1446_v54 = vcombine.high %v6125_v30, %v6183_v39  ;;  %v1526_v57 = vrot.slane %v1512_v7, %v6145_v3  ;;  %v6417_v51 = vrot.slane %v6178_v32, %v6145_v3  ;;  %v6425_v13 = vrot.slane %v6185_v40, %v6145_v3 }
 0x344   : > { %v1508_v60 = vcombine.high %v6393_v48, %v5926_v55  ;;  %v1475_v5 = vrot.slane %v1461_v49, %v6145_v3  ;;  %v6436_v40 = vrot.slane %v1477_v21, %v6166_v18  ;;  %v6442_v17 = vrot.slane %v6176_v31, %v6145_v3 }
 0x345   : > { %v1558_v30 = vcombine.low %v1526_v57, %v1541_v25  ;;  %v1460_v16 = vrot.slane %v1446_v54, %v6145_v3  ;;  %v1278_v20 = vcombine.low %v6425_v13, %v6417_v51  ;;  %v1115_v26 = vcombine.high %v1111_v11, %v5926_v55 }
 0x346   : > { %v2268_v32 = vsel %vm2116_vm1, %v1508_v60, 0  ;;  %v1509_v23 = vcombine.high %v6436_v40, %v5926_v55  ;;  %v1559_v7 = vcombine.high %v1526_v57, %v1541_v25  ;;  %v1236_v59 = vrot.slane %v1228_v12, %v6166_v18 }
 0x347   : > { %5524 = vmatmul.mubr.msk.bf16.vlgmr.msra.gmra.mrb[20].mxu0 %vm2112_vm2, %v6208_v58  ;;  %5556 = vmatmul.mubr.msk.bf16.vlgmr.msra.gmra.mrb[72].mxu1 %vm2112_vm2, %v6208_v58  ;;  %v1492_v35 = vcombine.low %v1460_v16, %v1475_v5  ;;  %v6455_v31 = vrot.slane %v1558_v30, %v6166_v18  ;;  %v1493_v57 = vcombine.high %v1460_v16, %v1475_v5 }
 0x348   : > { %2666 = vmatpush1.bf16.msra.mxu0 %v2142_v0  ;;  %2697 = vmatprep.mubr.bf16.mxu0 %v5926_v55  ;;  %v2154_v0 = vsel %vm2116_vm1, %v1111_v11, 0  ;;  %v2280_v49 = vsel %vm2116_vm1, %v1509_v23, 0  ;;  %v6480_v30 = vrot.slane %v1559_v7, %v6166_v18 }
 0x349   : > { %5527 = vmatprep.subr.msk.bf16.mxu0 %vm2116_vm1, %v1180_v2  ;;  %3363 = vmatpush1.bf16.msra.mxu1 %v2244_v6  ;;  %v1181_v2 = vcombine.high %v1177_v28, %v5926_v55  ;;  %v896_v6 = vpop.trf.xlu0  ;;  %v1576_v21 = vcombine.high %v6455_v31, %v5926_v55  ;;  %v6471_v60 = vrot.slane %v1492_v35, %v6166_v18 }
 0x34a   : > { %3394 = vmatprep.mubr.bf16.mxu1 %v5926_v55  ;;  %5563 = vmatprep.subr.msk.bf16.mxu1 %vm2116_vm1, %v1445_v4  ;;  %v1575_v4 = vcombine.high %v6410_v34, %v5926_v55  ;;  %v996_v54 = vpack.i.b16 %v912_v10, %v896_v6  ;;  %v1577_v16 = vcombine.high %v6480_v30, %v5926_v55 }
 0x34b   : > { %v1279_v35 = vcombine.high %v6425_v13, %v6417_v51 }
 0x34c   : > { %v1600_v5 = vrot.slane %v996_v54, %v6145_v3 }
 0x34d   : > { %v1293_v51 = vrot.slane %v1279_v35, %v6166_v18 }
 0x34f   : > { %5526 = vmatmul.mubr.msk.bf16.vlgmr.msra.gmra.mrb[24].mxu0 %vm2112_vm2, %v6208_v58  ;;  %5560 = vmatmul.mubr.msk.bf16.vlgmr.msra.gmra.mrb[76].mxu1 %vm2112_vm2, %v6208_v58 }
 0x350   : > { %2707 = vmatpush1.bf16.msra.mxu0 %v2148_v22  ;;  %2738 = vmatprep.mubr.bf16.mxu0 %v5926_v55  ;;  %v6450_v22 = vrot.slane %v6189_v41, %v6145_v3  ;;  %v1286_v41 = vrot.slane %v1278_v20, %v6166_v18 }
 0x351   : > { %5529 = vmatprep.subr.msk.bf16.mxu0 %vm2116_vm1, %v1177_v28  ;;  %3445 = vmatpush1.bf16.msra.mxu1 %v2256_v43  ;;  %v998_v28 = vshrl.u32 %v896_v6, 16 }
 0x352   : > { %3476 = vmatprep.mubr.bf16.mxu1 %v5926_v55  ;;  %5567 = vmatprep.subr.msk.bf16.mxu1 %vm2116_vm1, %v1574_v46  ;;  %v1212_v43 = vcombine.low %v6450_v22, %v6442_v17  ;;  %v2160_v46 = vsel %vm2116_vm1, %v1115_v26, 0  ;;  %v1310_v20 = vcombine.high %v1286_v41, %v5926_v55  ;;  %v6497_v26 = vrot.slane %v1493_v57, %v6166_v18 }
 0x353   : > { %v1000_v11 = vpack.i.b16 %v999_v15, %v998_v28  ;;  %v1585_v28 = vrot.slane %v6129_v36, %v6145_v3  ;;  %v1593_v57 = vcombine.high %v996_v54, %v6183_v39  ;;  %v1311_v54 = vcombine.high %v1293_v51, %v5926_v55 }
 0x354   : > { %v1220_v25 = vrot.slane %v1212_v43, %v6166_v18  ;;  %v1511_v43 = vcombine.high %v6497_v26, %v5926_v55 }
 0x355   : > { %v1608_v23 = vcombine.low %v1585_v28, %v1600_v5  ;;  %v1659_v13 = vcombine.high %v1000_v11, %v6183_v39 }
 0x356   : > { %v1244_v15 = vcombine.high %v1220_v25, %v5926_v55 }
 0x357   : > { %5528 = vmatmul.mubr.msk.bf16.vlgmr.msra.gmra.mrb[28].mxu0 %vm2112_vm2, %v6208_v58  ;;  %5564 = vmatmul.mubr.msk.bf16.vlgmr.msra.gmra.mrb[80].mxu1 %vm2112_vm2, %v6208_v58 }
 0x358   : > { %2748 = vmatpush1.bf16.msra.mxu0 %v2154_v0  ;;  %2779 = vmatprep.mubr.bf16.mxu0 %v5926_v55  ;;  %v1666_v0 = vrot.slane %v1000_v11, %v6145_v3  ;;  %v2172_v7 = vsel %vm2116_vm1, %v1244_v15, 0  ;;  %v1644_v11 = vcombine.high %v6131_v38, %v6183_v39 }
 0x359   : > { %5531 = vmatprep.subr.msk.bf16.mxu0 %vm2116_vm1, %v1181_v2  ;;  %3527 = vmatpush1.bf16.msra.mxu1 %v2268_v32  ;;  %v1510_v2 = vcombine.high %v6471_v60, %v5926_v55  ;;  %v1651_v32 = vrot.slane %v6131_v38, %v6145_v3 }
 0x35a   : > { %3558 = vmatprep.mubr.bf16.mxu1 %v5926_v55  ;;  %5571 = vmatprep.subr.msk.bf16.mxu1 %vm2116_vm1, %v1575_v4  ;;  %v2166_v4 = vsel %vm2116_vm1, %v1220_v25, 0  ;;  %v1658_v38 = vrot.slane %v1644_v11, %v6145_v3 }
 0x35b   : > { %v1674_v6 = vcombine.low %v1651_v32, %v1666_v0  ;;  %v2292_v10 = vsel %vm2116_vm1, %v1510_v2, 0  ;;  %v1673_v2 = vrot.slane %v1659_v13, %v6145_v3 }
 0x35f   : > { %5530 = vmatmul.mubr.msk.bf16.vlgmr.msra.gmra.mrb[32].mxu0 %vm2112_vm2, %v6208_v58  ;;  %5568 = vmatmul.mubr.msk.bf16.vlgmr.msra.gmra.mrb[84].mxu1 %vm2112_vm2, %v6208_v58 }
 0x360   : > { %2789 = vmatpush1.bf16.msra.mxu0 %v2160_v46  ;;  %2820 = vmatprep.mubr.bf16.mxu0 %v5926_v55  ;;  %v6509_v46 = vrot.slane %v1674_v6, %v6166_v18 }
 0x361   : > { %5533 = vmatprep.subr.msk.bf16.mxu0 %vm2116_vm1, %v1286_v41  ;;  %3609 = vmatpush1.bf16.msra.mxu1 %v2280_v49  ;;  %v1213_v41 = vcombine.high %v6450_v22, %v6442_v17  ;;  %v1675_v49 = vcombine.high %v1651_v32, %v1666_v0  ;;  %v6526_v22 = vrot.slane %v1608_v23, %v6166_v18 }
 0x362   : > { %3640 = vmatprep.mubr.bf16.mxu1 %v5926_v55  ;;  %5575 = vmatprep.subr.msk.bf16.mxu1 %vm2116_vm1, %v1576_v21  ;;  %v2304_v21 = vsel %vm2116_vm1, %v1511_v43, 0  ;;  %v1706_v17 = vcombine.high %v6509_v46, %v5926_v55  ;;  %v1609_v0 = vcombine.high %v1585_v28, %v1600_v5  ;;  %v1607_v5 = vrot.slane %v1593_v57, %v6145_v3  ;;  %v913_v28 = vpop.trf.xlu1 }
 0x363   : > { %v1227_v25 = vrot.slane %v1213_v41, %v6166_v18  ;;  %v1640_v32 = vcombine.high %v6526_v22, %v5926_v55 }
 0x364   : > { %v6556_v15 = vrot.slane %v1609_v0, %v6166_v18 }
 0x365   : > { %v2178_v6 = vsel %vm2116_vm1, %v1227_v25, 0  ;;  %v1245_v43 = vcombine.high %v1227_v25, %v5926_v55  ;;  %v1691_v25 = vcombine.high %v1658_v38, %v1673_v2 }
 0x366   : > { %v1641_v13 = vcombine.high %v6556_v15, %v5926_v55 }
 0x367   : > { %5532 = vmatmul.mubr.msk.bf16.vlgmr.msra.gmra.mrb[36].mxu0 %vm2112_vm2, %v6208_v58  ;;  %5572 = vmatmul.mubr.msk.bf16.vlgmr.msra.gmra.mrb[88].mxu1 %vm2112_vm2, %v6208_v58 }
 0x368   : > { %2830 = vmatpush1.bf16.msra.mxu0 %v2166_v4  ;;  %2861 = vmatprep.mubr.bf16.mxu0 %v5926_v55  ;;  %v6538_v4 = vrot.slane %v1675_v49, %v6166_v18  ;;  %v2328_v57 = vsel %vm2116_vm1, %v1641_v13, 0 }
 0x369   : > { %5535 = vmatprep.subr.msk.bf16.mxu0 %vm2116_vm1, %v1310_v20  ;;  %3691 = vmatpush1.bf16.msra.mxu1 %v2292_v10  ;;  %v1578_v20 = vcombine.high %v6129_v36, %v6183_v39  ;;  %v1690_v10 = vcombine.low %v1658_v38, %v1673_v2  ;;  %v2316_v36 = vsel %vm2116_vm1, %v1640_v32, 0  ;;  %v6594_v38 = vrot.slane %v1691_v25, %v6166_v18 }
 0x36a   : > { %3722 = vmatprep.mubr.bf16.mxu1 %v5926_v55  ;;  %5579 = vmatprep.subr.msk.bf16.mxu1 %vm2116_vm1, %v1577_v16  ;;  %v897_v16 = vpop.trf.xlu0  ;;  %v1707_v35 = vcombine.high %v6538_v4, %v5926_v55 }
 0x36b   : > { %v1592_v23 = vrot.slane %v1578_v20, %v6145_v3  ;;  %v1014_v41 = vshrl.u32 %v897_v16, 16  ;;  %v6565_v49 = vrot.slane %v1690_v10, %v6166_v18  ;;  %v1012_v62 = vpack.i.b16 %v913_v28, %v897_v16 }
 0x36c   : > { %v1709_v10 = vcombine.high %v6594_v38, %v5926_v55 }
 0x36d   : > { %v1708_v0 = vcombine.high %v6565_v49, %v5926_v55  ;;  %v1732_v1 = vrot.slane %v1012_v62, %v6145_v3  ;;  %v1725_v25 = vcombine.high %v1012_v62, %v6183_v39 }
 0x36f   : > { %5534 = vmatmul.mubr.msk.bf16.vlgmr.msra.gmra.mrb[40].mxu0 %vm2112_vm2, %v6208_v58  ;;  %5576 = vmatmul.mubr.msk.bf16.vlgmr.msra.gmra.mrb[92].mxu1 %vm2112_vm2, %v6208_v58  ;;  %v1739_v62 = vrot.slane %v1725_v25, %v6145_v3  ;;  %v1915_v25 = vrot.slane %v6139_v50, %v6145_v3 }
 0x370   : > { %2871 = vmatpush1.bf16.msra.mxu0 %v2172_v7  ;;  %2902 = vmatprep.mubr.bf16.mxu0 %v5926_v55  ;;  %v1015_v7 = vshrl.u32 %v913_v28, 16  ;;  %v1717_v28 = vrot.slane %v6133_v42, %v6145_v3 }
 0x371   : > { %5537 = vmatprep.subr.msk.bf16.mxu0 %vm2116_vm1, %v1293_v51  ;;  %3773 = vmatpush1.bf16.msra.mxu1 %v2304_v21  ;;  %v1624_v51 = vcombine.low %v1592_v23, %v1607_v5  ;;  %v2184_v21 = vsel %vm2116_vm1, %v1245_v43, 0 }
 0x372   : > { %3804 = vmatprep.mubr.bf16.mxu1 %v5926_v55  ;;  %5583 = vmatprep.subr.msk.bf16.mxu1 %vm2116_vm1, %v1706_v17  ;;  %v1302_v17 = vrot.slane %v1294_v14, %v6166_v18  ;;  %v1016_v11 = vpack.i.b16 %v1015_v7, %v1014_v41  ;;  %v1625_v14 = vcombine.high %v1592_v23, %v1607_v5 }
 0x373   : > { %v6582_v32 = vrot.slane %v1624_v51, %v6166_v18 }
 0x374   : > { %v1798_v2 = vrot.slane %v1016_v11, %v6145_v3  ;;  %v1312_v61 = vcombine.high %v1302_v17, %v5926_v55  ;;  %v6611_v16 = vrot.slane %v1625_v14, %v6166_v18  ;;  %v1791_v7 = vcombine.high %v1016_v11, %v6183_v39 }
 0x375   : > { %v1642_v20 = vcombine.high %v6582_v32, %v5926_v55  ;;  %v1776_v11 = vcombine.high %v6135_v45, %v6183_v39  ;;  %v1710_v14 = vcombine.high %v6133_v42, %v6183_v39 }
 0x376   : > { %v1643_v23 = vcombine.high %v6611_v16, %v5926_v55 }
 0x377   : > { %5536 = vmatmul.mubr.msk.bf16.vlgmr.msra.gmra.mrb[44].mxu0 %vm2112_vm2, %v6208_v58  ;;  %5580 = vmatmul.mubr.msk.bf16.vlgmr.msra.gmra.mrb[96].mxu1 %vm2112_vm2, %v6208_v58  ;;  %v2340_v5 = vsel %vm2116_vm1, %v1642_v20, 0 }
 0x378   : > { %2912 = vmatpush1.bf16.msra.mxu0 %v2178_v6  ;;  %2943 = vmatprep.mubr.bf16.mxu0 %v5926_v55  ;;  %v1783_v6 = vrot.slane %v6135_v45, %v6145_v3  ;;  %v2352_v13 = vsel %vm2116_vm1, %v1643_v23, 0  ;;  %v2202_v45 = vsel %vm2116_vm1, %v6248_v27, 0 }
 0x379   : > { %5539 = vmatprep.subr.msk.bf16.mxu0 %vm2116_vm1, %v1311_v54  ;;  %3855 = vmatpush1.bf16.msra.mxu1 %v2316_v36  ;;  %v2190_v54 = vsel %vm2116_vm1, %v1236_v59, 0  ;;  %v1246_v36 = vcombine.high %v1236_v59, %v5926_v55 }
 0x37a   : > { %3886 = vmatprep.mubr.bf16.mxu1 %v5926_v55  ;;  %5587 = vmatprep.subr.msk.bf16.mxu1 %vm2116_vm1, %v1707_v35  ;;  %v1806_v12 = vcombine.low %v1783_v6, %v1798_v2  ;;  %v1740_v35 = vcombine.low %v1717_v28, %v1732_v1  ;;  %v1807_v51 = vcombine.high %v1783_v6, %v1798_v2  ;;  %v898_v6 = vpop.trf.xlu0 }
 0x37b   : > { %v2196_v41 = vsel %vm2116_vm1, %v1246_v36, 0  ;;  %v1790_v2 = vrot.slane %v1776_v11, %v6145_v3  ;;  %v2214_v36 = vsel %vm2116_vm1, %v6268_v44, 0 }
 0x37c   : > { %v6621_v43 = vrot.slane %v1806_v12, %v6166_v18  ;;  %v6647_v59 = vrot.slane %v1807_v51, %v6166_v18  ;;  %v1030_v12 = vshrl.u32 %v898_v6, 16 }
 0x37f   : > { %5538 = vmatmul.mubr.msk.bf16.vlgmr.msra.gmra.mrb[48].mxu0 %vm2112_vm2, %v6208_v58  ;;  %5584 = vmatmul.mubr.msk.bf16.vlgmr.msra.gmra.mrb[100].mxu1 %vm2112_vm2, %v6208_v58 }
 0x380   : > { %2953 = vmatpush1.bf16.msra.mxu0 %v2184_v21  ;;  %2984 = vmatprep.mubr.bf16.mxu0 %v5926_v55  ;;  %v1838_v21 = vcombine.high %v6621_v43, %v5926_v55 }
 0x381   : > { %5541 = vmatprep.subr.msk.bf16.mxu0 %vm2116_vm1, %v1302_v17  ;;  %3937 = vmatpush1.bf16.msra.mxu1 %v2328_v57  ;;  %v6636_v17 = vrot.slane %v1740_v35, %v6166_v18  ;;  %v1741_v57 = vcombine.high %v1717_v28, %v1732_v1  ;;  %v1724_v1 = vrot.slane %v1710_v14, %v6145_v3 }
 0x382   : > { %3968 = vmatprep.mubr.bf16.mxu1 %v5926_v55  ;;  %5591 = vmatprep.subr.msk.bf16.mxu1 %vm2116_vm1, %v1708_v0  ;;  %v1805_v0 = vrot.slane %v1791_v7, %v6145_v3 }
 0x383   : > { %v6666_v27 = vrot.slane %v1741_v57, %v6166_v18  ;;  %v2226_v57 = vsel %vm2116_vm1, %v6322_v33, 0  ;;  %v1849_v33 = vrot.slane %v6137_v47, %v6145_v3 }
 0x384   : > { %v1822_v20 = vcombine.low %v1790_v2, %v1805_v0  ;;  %v1823_v35 = vcombine.high %v1790_v2, %v1805_v0 }
 0x386   : > { %v6674_v28 = vrot.slane %v1822_v20, %v6166_v18 }
 0x387   : > { %5540 = vmatmul.mubr.msk.bf16.vlgmr.msra.gmra.mrb[52].mxu0 %vm2112_vm2, %v6208_v58  ;;  %5588 = vmatmul.mubr.msk.bf16.vlgmr.msra.gmra.mrb[104].mxu1 %vm2112_vm2, %v6208_v58 }
 0x388   : > { %2994 = vmatpush1.bf16.msra.mxu0 %v2190_v54  ;;  %3025 = vmatprep.mubr.bf16.mxu0 %v5926_v55  ;;  %v1839_v54 = vcombine.high %v6647_v59, %v5926_v55  ;;  %v1840_v7 = vcombine.high %v6674_v28, %v5926_v55 }
 0x389   : > { %5543 = vmatprep.subr.msk.bf16.mxu0 %vm2116_vm1, %v1312_v61  ;;  %4019 = vmatpush1.bf16.msra.mxu1 %v2340_v5  ;;  %v914_v61 = vpop.trf.xlu1  ;;  %v1756_v5 = vcombine.low %v1724_v1, %v1739_v62 }
 0x38a   : > { %4050 = vmatprep.mubr.bf16.mxu1 %v5926_v55  ;;  %5595 = vmatprep.subr.msk.bf16.mxu1 %vm2116_vm1, %v1709_v10  ;;  %v1031_v10 = vshrl.u32 %v914_v61, 16  ;;  %v1028_v44 = vpack.i.b16 %v914_v61, %v898_v6  ;;  %v2238_v6 = vsel %vm2116_vm1, %v6335_v52, 0  ;;  %v1908_v52 = vcombine.high %v6139_v50, %v6183_v39 }
 0x38b   : > { %v6689_v51 = vrot.slane %v1756_v5, %v6166_v18  ;;  %v2250_v50 = vsel %vm2116_vm1, %v6365_v9, 0 }
 0x38c   : > { %v1032_v23 = vpack.i.b16 %v1031_v10, %v1030_v12  ;;  %v1864_v0 = vrot.slane %v1028_v44, %v6145_v3  ;;  %v1857_v5 = vcombine.high %v1028_v44, %v6183_v39  ;;  %v899_v44 = vpop.trf.xlu0 }
 0x38d   : > { %v1774_v11 = vcombine.high %v6689_v51, %v5926_v55 }
 0x38e   : > { %v1873_v10 = vcombine.high %v1849_v33, %v1864_v0 }
 0x38f   : > { %5542 = vmatmul.mubr.msk.bf16.vlgmr.msra.gmra.mrb[56].mxu0 %vm2112_vm2, %v6208_v58  ;;  %5592 = vmatmul.mubr.msk.bf16.vlgmr.msra.gmra.mrb[108].mxu1 %vm2112_vm2, %v6208_v58  ;;  %v2388_v14 = vsel %vm2116_vm1, %v1774_v11, 0 }
 0x390   : > { %3035 = vmatpush1.bf16.msra.mxu0 %v2196_v41  ;;  %3066 = vmatprep.mubr.bf16.mxu0 %v5926_v55  ;;  %v6770_v9 = vrot.slane %v1873_v10, %v6166_v18 }
 0x391   : > { %5545 = vmatprep.subr.msk.bf16.mxu0 %vm2116_vm1, %v6243_v24  ;;  %4101 = vmatpush1.bf16.msra.mxu1 %v2352_v13  ;;  %v1772_v24 = vcombine.high %v6636_v17, %v5926_v55  ;;  %v1757_v13 = vcombine.high %v1724_v1, %v1739_v62  ;;  %v1872_v62 = vcombine.low %v1849_v33, %v1864_v0 }
 0x392   : > { %4132 = vmatprep.mubr.bf16.mxu1 %v5926_v55  ;;  %5599 = vmatprep.subr.msk.bf16.mxu1 %vm2116_vm1, %v1838_v21  ;;  %v1930_v21 = vrot.slane %v1032_v23, %v6145_v3 }
 0x393   : > { %v2364_v42 = vsel %vm2116_vm1, %v1772_v24, 0  ;;  %v6740_v12 = vrot.slane %v1872_v62, %v6166_v18 }
 0x394   : > { %v1938_v24 = vcombine.low %v1915_v25, %v1930_v21 }
 0x397   : > { %5544 = vmatmul.mubr.msk.bf16.vlgmr.msra.gmra.mrb[60].mxu0 %vm2112_vm2, %v6208_v58  ;;  %5596 = vmatmul.mubr.msk.bf16.vlgmr.msra.gmra.mrb[112].mxu1 %vm2112_vm2, %v6208_v58 }
 0x398   : > { %3076 = vmatpush1.bf16.msra.mxu0 %v2202_v45  ;;  %3107 = vmatprep.mubr.bf16.mxu0 %v5926_v55  ;;  %v6715_v45 = vrot.slane %v1757_v13, %v6166_v18  ;;  %v915_v13 = vpop.trf.xlu1 }
 0x399   : > { %5549 = vmatprep.subr.msk.bf16.mxu0 %vm2116_vm1, %v6261_v29  ;;  %4183 = vmatpush1.bf16.msra.mxu1 %v2364_v42  ;;  %v1773_v29 = vcombine.high %v6666_v27, %v5926_v55  ;;  %v1923_v42 = vcombine.high %v1032_v23, %v6183_v39  ;;  %v1922_v23 = vrot.slane %v1908_v52, %v6145_v3  ;;  %v2274_v52 = vsel %vm2116_vm1, %v6436_v40, 0 }
 0x39a   : > { %4214 = vmatprep.mubr.bf16.mxu1 %v5926_v55  ;;  %5603 = vmatprep.subr.msk.bf16.mxu1 %vm2116_vm1, %v1839_v54  ;;  %v1775_v20 = vcombine.high %v6715_v45, %v5926_v55  ;;  %v1939_v54 = vcombine.high %v1915_v25, %v1930_v21  ;;  %v1046_v25 = vshrl.u32 %v899_v44, 16  ;;  %v1981_v40 = vrot.slane %v6141_v53, %v6145_v3 }
 0x39b   : > { %v2376_v41 = vsel %vm2116_vm1, %v1773_v29, 0  ;;  %v1937_v29 = vrot.slane %v1923_v42, %v6145_v3 }
 0x39c   : > { %v2400_v61 = vsel %vm2116_vm1, %v1775_v20, 0 }
 0x39d   : > { %v1955_v33 = vcombine.high %v1922_v23, %v1937_v29 }
 0x39f   : > { %5546 = vmatmul.mubr.msk.bf16.vlgmr.msra.gmra.mrb[64].mxu0 %vm2112_vm2, %v6208_v58  ;;  %5600 = vmatmul.mubr.msk.bf16.vlgmr.msra.gmra.mrb[116].mxu1 %vm2112_vm2, %v6208_v58 }
 0x3a0   : > { %3158 = vmatpush1.bf16.msra.mxu0 %v2214_v36  ;;  %3189 = vmatprep.mubr.bf16.mxu0 %v5926_v55  ;;  %v6751_v36 = vrot.slane %v1939_v54, %v6166_v18 }
 0x3a1   : > { %5553 = vmatprep.subr.msk.bf16.mxu0 %vm2116_vm1, %v6286_v63  ;;  %4265 = vmatpush1.bf16.msra.mxu1 %v2376_v41  ;;  %v6697_v63 = vrot.slane %v1823_v35, %v6166_v18  ;;  %v1842_v35 = vcombine.high %v6137_v47, %v6183_v39  ;;  %v1871_v41 = vrot.slane %v1857_v5, %v6145_v3 }
 0x3a2   : > { %4296 = vmatprep.mubr.bf16.mxu1 %v5926_v55  ;;  %5607 = vmatprep.subr.msk.bf16.mxu1 %vm2116_vm1, %v1840_v7  ;;  %v1954_v7 = vcombine.low %v1922_v23, %v1937_v29  ;;  %v1971_v21 = vcombine.high %v6751_v36, %v5926_v55 }
 0x3a3   : > { %v1841_v2 = vcombine.high %v6697_v63, %v5926_v55  ;;  %v1856_v11 = vrot.slane %v1842_v35, %v6145_v3 }
 0x3a5   : > { %v1888_v0 = vcombine.low %v1856_v11, %v1871_v41  ;;  %v1889_v42 = vcombine.high %v1856_v11, %v1871_v41  ;;  %v2286_v41 = vsel %vm2116_vm1, %v6471_v60, 0 }
 0x3a7   : > { %5550 = vmatmul.mubr.msk.bf16.vlgmr.msra.gmra.mrb[68].mxu0 %vm2112_vm2, %v6208_v58  ;;  %5604 = vmatmul.mubr.msk.bf16.vlgmr.msra.gmra.mrb[120].mxu1 %vm2112_vm2, %v6208_v58  ;;  %v6819_v35 = vrot.slane %v1889_v42, %v6166_v18 }
 0x3a8   : > { %3240 = vmatpush1.bf16.msra.mxu0 %v2226_v57  ;;  %3271 = vmatprep.mubr.bf16.mxu0 %v5926_v55  ;;  %v1047_v57 = vshrl.u32 %v915_v13, 16 }
 0x3a9   : > { %5557 = vmatprep.subr.msk.bf16.mxu0 %vm2116_vm1, %v6325_v37  ;;  %4347 = vmatpush1.bf16.msra.mxu1 %v2388_v14  ;;  %v6724_v37 = vrot.slane %v1938_v24, %v6166_v18  ;;  %v1905_v24 = vcombine.high %v6770_v9, %v5926_v55  ;;  %v2262_v14 = vsel %vm2116_vm1, %v6393_v48, 0  ;;  %v1044_v48 = vpack.i.b16 %v915_v13, %v899_v44 }
 0x3aa   : > { %4378 = vmatprep.mubr.bf16.mxu1 %v5926_v55  ;;  %5611 = vmatprep.subr.msk.bf16.mxu1 %vm2116_vm1, %v1841_v2  ;;  %v1048_v2 = vpack.i.b16 %v1047_v57, %v1046_v25 }
 0x3ab   : > { %v1970_v1 = vcombine.high %v6724_v37, %v5926_v55  ;;  %v2424_v62 = vsel %vm2116_vm1, %v1905_v24, 0  ;;  %v1996_v5 = vrot.slane %v1044_v48, %v6145_v3  ;;  %v1989_v11 = vcombine.high %v1044_v48, %v6183_v39 }
 0x3ac   : > { %v2062_v54 = vrot.slane %v1048_v2, %v6145_v3  ;;  %v1974_v24 = vcombine.high %v6141_v53, %v6183_v39 }
 0x3ad   : > { %v2004_v23 = vcombine.low %v1981_v40, %v1996_v5  ;;  %v2005_v25 = vcombine.high %v1981_v40, %v1996_v5  ;;  %v6948_v40 = vpop.permute.xlu0 %2109 }
 0x3af   : > { %5554 = vmatmul.mubr.msk.bf16.vlgmr.msra.gmra.mrb[72].mxu0 %vm2112_vm2, %v6208_v58  ;;  %5608 = vmatmul.mubr.msk.bf16.vlgmr.msra.gmra.mrb[124].mxu1 %vm2112_vm2, %v6208_v58  ;;  %v6837_v44 = vrot.slane %v2004_v23, %v6166_v18 }
 0x3b0   : > { %3322 = vmatpush1.bf16.msra.mxu0 %v2238_v6  ;;  %3353 = vmatprep.mubr.bf16.mxu0 %v5926_v55  ;;  %v6793_v6 = vrot.slane %v1888_v0, %v6166_v18 }
 0x3b1   : > { %5561 = vmatprep.subr.msk.bf16.mxu0 %vm2116_vm1, %v6344_v8  ;;  %4429 = vmatpush1.bf16.msra.mxu1 %v2400_v61  ;;  %v1904_v8 = vcombine.high %v6740_v12, %v5926_v55 }
 0x3b2   : > { %4460 = vmatprep.mubr.bf16.mxu1 %v5926_v55  ;;  %5615 = vmatprep.subr.msk.bf16.mxu1 %vm2116_vm1, %v1970_v1  ;;  %v1906_v61 = vcombine.high %v6793_v6, %v5926_v55  ;;  %v2047_v1 = vrot.slane %v6143_v56, %v6145_v3 }
 0x3b3   : > { %v2412_v47 = vsel %vm2116_vm1, %v1904_v8, 0 }
 0x3b4   : > { %v2070_v10 = vcombine.low %v2047_v1, %v2062_v54  ;;  %v2436_v29 = vsel %vm2116_vm1, %v1906_v61, 0  ;;  %v2071_v13 = vcombine.high %v2047_v1, %v2062_v54 }
 0x3b6   : > { %v6853_v0 = vrot.slane %v2071_v13, %v6166_v18 }
 0x3b7   : > { %5558 = vmatmul.mubr.msk.bf16.vlgmr.msra.gmra.mrb[76].mxu0 %vm2112_vm2, %v6208_v58  ;;  %5612 = vmatmul.mubr.msk.bf16.vlgmr.msra.gmra.mrb[128].mxu1 %vm2112_vm2, %v6208_v58 }
 0x3b8   : > { %3404 = vmatpush1.bf16.msra.mxu0 %v2250_v50  ;;  %3435 = vmatprep.mubr.bf16.mxu0 %v5926_v55  ;;  %v6826_v50 = vrot.slane %v2070_v10, %v6166_v18 }
 0x3b9   : > { %5565 = vmatprep.subr.msk.bf16.mxu0 %vm2116_vm1, %v6375_v19  ;;  %4511 = vmatpush1.bf16.msra.mxu1 %v2412_v47  ;;  %v6778_v19 = vrot.slane %v1954_v7, %v6166_v18  ;;  %v2055_v7 = vcombine.high %v1048_v2, %v6183_v39  ;;  %v2003_v2 = vrot.slane %v1989_v11, %v6145_v3 }
 0x3ba   : > { %4542 = vmatprep.mubr.bf16.mxu1 %v5926_v55  ;;  %5619 = vmatprep.subr.msk.bf16.mxu1 %vm2116_vm1, %v1971_v21  ;;  %v2102_v60 = vcombine.high %v6826_v50, %v5926_v55  ;;  %v2040_v21 = vcombine.high %v6143_v56, %v6183_v39  ;;  %v2298_v56 = vsel %vm2116_vm1, %v6497_v26, 0  ;;  %v2103_v39 = vcombine.high %v6853_v0, %v5926_v55 }
 0x3bb   : > { %v1972_v20 = vcombine.high %v6778_v19, %v5926_v55  ;;  %v2069_v57 = vrot.slane %v2055_v7, %v6145_v3  ;;  %v1988_v26 = vrot.slane %v1974_v24, %v6145_v3  ;;  %v2370_v24 = vsel %vm2116_vm1, %v6666_v27, 0 }
 0x3bf   : > { %5562 = vmatmul.mubr.msk.bf16.vlgmr.msra.gmra.mrb[80].mxu0 %vm2112_vm2, %v6208_v58  ;;  %5616 = vmatmul.mubr.msk.bf16.vlgmr.msra.gmra.mrb[132].mxu1 %vm2112_vm2, %v6208_v58 }
 0x3c0   : > { %3486 = vmatpush1.bf16.msra.mxu0 %v2262_v14  ;;  %3517 = vmatprep.mubr.bf16.mxu0 %v5926_v55  ;;  %v2054_v14 = vrot.slane %v2040_v21, %v6145_v3  ;;  %v2310_v3 = vsel %vm2116_vm1, %v6526_v22, 0  ;;  %v2021_v22 = vcombine.high %v1988_v26, %v2003_v2 }
 0x3c1   : > { %5569 = vmatprep.subr.msk.bf16.mxu0 %vm2116_vm1, %v6410_v34  ;;  %4593 = vmatpush1.bf16.msra.mxu1 %v2424_v62  ;;  %v6801_v34 = vrot.slane %v1955_v33, %v6166_v18  ;;  %v6867_v33 = vrot.slane %v2005_v25, %v6166_v18 }
 0x3c2   : > { %4624 = vmatprep.mubr.bf16.mxu1 %v5926_v55  ;;  %5623 = vmatprep.subr.msk.bf16.mxu1 %vm2116_vm1, %v1972_v20  ;;  %v2086_v62 = vcombine.low %v2054_v14, %v2069_v57  ;;  %v2020_v20 = vcombine.low %v1988_v26, %v2003_v2  ;;  %v2087_v42 = vcombine.high %v2054_v14, %v2069_v57 }
 0x3c3   : > { %v1973_v8 = vcombine.high %v6801_v34, %v5926_v55  ;;  %v2037_v48 = vcombine.high %v6867_v33, %v5926_v55 }
 0x3c4   : > { %v6902_v1 = vrot.slane %v2020_v20, %v6166_v18  ;;  %v6909_v5 = vrot.slane %v2087_v42, %v6166_v18 }
 0x3c5   : > { %v2472_v54 = vsel %vm2116_vm1, %v2037_v48, 0 }
 0x3c7   : > { %5566 = vmatmul.mubr.msk.bf16.vlgmr.msra.gmra.mrb[84].mxu0 %vm2112_vm2, %v6208_v58  ;;  %5620 = vmatmul.mubr.msk.bf16.vlgmr.msra.gmra.mrb[136].mxu1 %vm2112_vm2, %v6208_v58 }
 0x3c8   : > { %3568 = vmatpush1.bf16.msra.mxu0 %v2274_v52  ;;  %3599 = vmatprep.mubr.bf16.mxu0 %v5926_v55  ;;  %v2038_v52 = vcombine.high %v6902_v1, %v5926_v55 }
 0x3c9   : > { %5573 = vmatprep.subr.msk.bf16.mxu0 %vm2116_vm1, %v6455_v31  ;;  %4675 = vmatpush1.bf16.msra.mxu1 %v2436_v29  ;;  %v1907_v31 = vcombine.high %v6819_v35, %v5926_v55  ;;  %v2105_v29 = vcombine.high %v6909_v5, %v5926_v55 }
 0x3ca   : > { %4706 = vmatprep.mubr.bf16.mxu1 %v5926_v55  ;;  %5627 = vmatprep.subr.msk.bf16.mxu1 %vm2116_vm1, %v1973_v8  ;;  %v2484_v10 = vsel %vm2116_vm1, %v2038_v52, 0  ;;  %v6924_v8 = vrot.slane %v2021_v22, %v6166_v18 }
 0x3cb   : > { %v2448_v47 = vsel %vm2116_vm1, %v1907_v31, 0 }
 0x3cf   : > { %5570 = vmatmul.mubr.msk.bf16.vlgmr.msra.gmra.mrb[88].mxu0 %vm2112_vm2, %v6208_v58  ;;  %5624 = vmatmul.mubr.msk.bf16.vlgmr.msra.gmra.mrb[140].mxu1 %vm2112_vm2, %v6208_v58 }
 0x3d0   : > { %3650 = vmatpush1.bf16.msra.mxu0 %v2286_v41  ;;  %3681 = vmatprep.mubr.bf16.mxu0 %v5926_v55 }
 0x3d1   : > { %5577 = vmatprep.subr.msk.bf16.mxu0 %vm2116_vm1, %v6480_v30  ;;  %4757 = vmatpush1.bf16.msra.mxu1 %v2448_v47  ;;  %v2036_v30 = vcombine.high %v6837_v44, %v5926_v55 }
 0x3d2   : > { %4788 = vmatprep.mubr.bf16.mxu1 %v5926_v55  ;;  %5631 = vmatprep.subr.msk.bf16.mxu1 %vm2116_vm1, %v2102_v60 }
 0x3d3   : > { %v2460_v53 = vsel %vm2116_vm1, %v2036_v30, 0 }
 0x3d7   : > { %5574 = vmatmul.mubr.msk.bf16.vlgmr.msra.gmra.mrb[92].mxu0 %vm2112_vm2, %v6208_v58  ;;  %5628 = vmatmul.mubr.msk.bf16.vlgmr.msra.gmra.mrb[144].mxu1 %vm2112_vm2, %v6208_v58  ;;  %v6882_v58 = vrot.slane %v2086_v62, %v6166_v18 }
 0x3d8   : > { %3732 = vmatpush1.bf16.msra.mxu0 %v2298_v56  ;;  %3763 = vmatprep.mubr.bf16.mxu0 %v5926_v55 }
 0x3d9   : > { %5581 = vmatprep.subr.msk.bf16.mxu0 %vm2116_vm1, %v6509_v46  ;;  %4839 = vmatpush1.bf16.msra.mxu1 %v2460_v53  ;;  %v6887_v46 = vld [vmem:[%s7347_s3] sm:$0xf]  ;;  %v2104_v61 = vcombine.high %v6882_v58, %v5926_v55 }
 0x3da   : > { %4870 = vmatprep.mubr.bf16.mxu1 %v5926_v55  ;;  %5635 = vmatprep.subr.msk.bf16.mxu1 %vm2116_vm1, %v2103_v39 }
 0x3df   : > { %5578 = vmatmul.mubr.msk.bf16.vlgmr.msra.gmra.mrb[96].mxu0 %vm2112_vm2, %v6887_v46  ;;  %5632 = vmatmul.mubr.msk.bf16.vlgmr.msra.gmra.mrb[148].mxu1 %vm2112_vm2, %v6887_v46 }
 0x3e0   : > { %3814 = vmatpush1.bf16.msra.mxu0 %v2310_v3  ;;  %3845 = vmatprep.mubr.bf16.mxu0 %v5926_v55 }
 0x3e1   : > { %5585 = vmatprep.subr.msk.bf16.mxu0 %vm2116_vm1, %v6538_v4  ;;  %4921 = vmatpush1.bf16.msra.mxu1 %v2472_v54  ;;  %v2322_v4 = vsel %vm2116_vm1, %v6556_v15, 0  ;;  %v2039_v15 = vcombine.high %v6924_v8, %v5926_v55  ;;  %v2382_v54 = vsel %vm2116_vm1, %v6689_v51, 0 }
 0x3e2   : > { %4952 = vmatprep.mubr.bf16.mxu1 %v5926_v55  ;;  %5639 = vmatprep.subr.msk.bf16.mxu1 %vm2116_vm1, %v2104_v61 }
 0x3e3   : > { %v2496_v18 = vsel %vm2116_vm1, %v2039_v15, 0 }
 0x3e7   : > { %5582 = vmatmul.mubr.msk.bf16.vlgmr.msra.gmra.mrb[100].mxu0 %vm2112_vm2, %v6887_v46  ;;  %5636 = vmatmul.mubr.msk.bf16.vlgmr.msra.gmra.mrb[152].mxu1 %vm2112_vm2, %v6887_v46 }
 0x3e8   : > { %3896 = vmatpush1.bf16.msra.mxu0 %v2322_v4  ;;  %3927 = vmatprep.mubr.bf16.mxu0 %v5926_v55 }
 0x3e9   : > { %5589 = vmatprep.subr.msk.bf16.mxu0 %vm2116_vm1, %v6565_v49  ;;  %5003 = vmatpush1.bf16.msra.mxu1 %v2484_v10  ;;  %v2334_v49 = vsel %vm2116_vm1, %v6582_v32, 0  ;;  %v2346_v32 = vsel %vm2116_vm1, %v6611_v16, 0 }
 0x3ea   : > { %5034 = vmatprep.mubr.bf16.mxu1 %v5926_v55  ;;  %5643 = vmatprep.subr.msk.bf16.mxu1 %vm2116_vm1, %v2105_v29 }
 0x3ef   : > { %5586 = vmatmul.mubr.msk.bf16.vlgmr.msra.gmra.mrb[104].mxu0 %vm2112_vm2, %v6887_v46  ;;  %5640 = vmatmul.mubr.msk.bf16.vlgmr.msra.gmra.mrb[156].mxu1 %vm2112_vm2, %v6887_v46 }
 0x3f0   : > { %3978 = vmatpush1.bf16.msra.mxu0 %v2334_v49  ;;  %4009 = vmatprep.mubr.bf16.mxu0 %v5926_v55 }
 0x3f1   : > { %5593 = vmatprep.subr.msk.bf16.mxu0 %vm2116_vm1, %v6594_v38  ;;  %5085 = vmatpush1.bf16.msra.mxu1 %v2496_v18 }
 0x3f2   : > { %5116 = vmatprep.mubr.bf16.mxu1 %v5926_v55 }
 0x3f7   : > { %5590 = vmatmul.mubr.msk.bf16.vlgmr.msra.gmra.mrb[108].mxu0 %vm2112_vm2, %v6887_v46  ;;  %5644 = vmatmul.mubr.msk.bf16.vlgmr.msra.gmra.mrb[160].mxu1 %vm2112_vm2, %v6887_v46 }
 0x3f8   : > { %4060 = vmatpush1.bf16.msra.mxu0 %v2346_v32  ;;  %4091 = vmatprep.mubr.bf16.mxu0 %v5926_v55 }
 0x3f9   : > { %5597 = vmatprep.subr.msk.bf16.mxu0 %vm2116_vm1, %v6621_v43  ;;  %v2358_v43 = vsel %vm2116_vm1, %v6636_v17, 0 }
 0x3ff   : > { %5594 = vmatmul.mubr.msk.bf16.vlgmr.msra.gmra.mrb[112].mxu0 %vm2112_vm2, %v6887_v46 }
 0x400   : > { %4142 = vmatpush1.bf16.msra.mxu0 %v2358_v43  ;;  %4173 = vmatprep.mubr.bf16.mxu0 %v5926_v55 }
 0x401   : > { %5601 = vmatprep.subr.msk.bf16.mxu0 %vm2116_vm1, %v6647_v59 }
 0x402   : > { %v2535_v38 = vpop.f32.mrb[8].mxu0 }
 0x403   : > { %v2537_v23 = vpop.f32.mrb[9].mxu0  ;;  %v2536_v31 = vadd.f32 %v2535_v38, %v6948_v40  ;;  %v2394_v38 = vsel %vm2116_vm1, %v6715_v45, 0 }
 0x404   : > { %v2539_v41 = vpop.f32.mrb[10].mxu0  ;;  %v2538_v7 = vadd.f32 %v2537_v23, %v6948_v40 }
 0x405   : > { %v5125_v16 = vmax.f32 %v2536_v31, 0.0  ;;  %v2540_v13 = vpop.f32.mrb[11].mxu0 }
 0x406   : > { %v5126_v47 = vmax.f32 %v2538_v7, 0.0 }
 0x407   : > { %5253 = vst [vmem:[%s6960_s17] sm:$0xff] %v5125_v16  ;;  %5598 = vmatmul.mubr.msk.bf16.vlgmr.msra.gmra.mrb[116].mxu0 %vm2112_vm2, %v6887_v46 }
 0x408   : > { %5254 = vst [vmem:[%s6960_s17 + $0x8] sm:$0xff] %v5126_v47  ;;  %4224 = vmatpush1.bf16.msra.mxu0 %v2370_v24  ;;  %4255 = vmatprep.mubr.bf16.mxu0 %v5926_v55 }
 0x409   : > { %5605 = vmatprep.subr.msk.bf16.mxu0 %vm2116_vm1, %v6674_v28 }
 0x40a   : > { %v2576_v60 = vpop.f32.mrb[12].mxu0  ;;  %v3150_v59 = vpop.f32.mrb[64].mxu1 }
 0x40b   : > { %v2577_v21 = vadd.f32 %v2576_v60, %v6948_v40  ;;  %v2578_v11 = vpop.f32.mrb[13].mxu0  ;;  %v3151_v56 = vadd.f32 %v3150_v59, %v6948_v40  ;;  %v3152_v2 = vpop.f32.mrb[65].mxu1 }
 0x40c   : > { %v2579_v17 = vadd.f32 %v2578_v11, %v6948_v40  ;;  %v2580_v25 = vpop.f32.mrb[14].mxu0  ;;  %v3153_v53 = vadd.f32 %v3152_v2, %v6948_v40  ;;  %v3154_v39 = vpop.f32.mrb[66].mxu1  ;;  %v2406_v11 = vsel %vm2116_vm1, %v6740_v12, 0 }
 0x40d   : > { %v5127_v57 = vmax.f32 %v2577_v21, 0.0  ;;  %v2581_v30 = vpop.f32.mrb[15].mxu0  ;;  %v5155_v20 = vmax.f32 %v3151_v56, 0.0  ;;  %v3155_v48 = vpop.f32.mrb[67].mxu1 }
 0x40e   : > { %v5128_v14 = vmax.f32 %v2579_v17, 0.0  ;;  %v5156_v42 = vmax.f32 %v3153_v53, 0.0 }
 0x40f   : > { %5255 = vst [vmem:[%s6960_s17 + $0x10] sm:$0xff] %v5127_v57  ;;  %5602 = vmatmul.mubr.msk.bf16.vlgmr.msra.gmra.mrb[120].mxu0 %vm2112_vm2, %v6887_v46  ;;  %5283 = vst [vmem:[%s6960_s17 + $0xf0] sm:$0xff] %v5155_v20  ;;  %v2418_v20 = vsel %vm2116_vm1, %v6770_v9, 0 }
 0x410   : > { %5256 = vst [vmem:[%s6960_s17 + $0x18] sm:$0xff] %v5128_v14  ;;  %4306 = vmatpush1.bf16.msra.mxu0 %v2382_v54  ;;  %4337 = vmatprep.mubr.bf16.mxu0 %v5926_v55  ;;  %5284 = vst [vmem:[%s6960_s17 + $0xf8] sm:$0xff] %v5156_v42 }
 0x411   : > { %5609 = vmatprep.subr.msk.bf16.mxu0 %vm2116_vm1, %v6697_v63 }
 0x412   : > { %v2617_v62 = vpop.f32.mrb[16].mxu0  ;;  %v3232_v4 = vpop.f32.mrb[68].mxu1 }
 0x413   : > { %v2618_v27 = vadd.f32 %v2617_v62, %v6948_v40  ;;  %v2619_v26 = vpop.f32.mrb[17].mxu0  ;;  %v3233_v10 = vadd.f32 %v3232_v4, %v6948_v40  ;;  %v3234_v29 = vpop.f32.mrb[69].mxu1 }
 0x414   : > { %v2620_v28 = vadd.f32 %v2619_v26, %v6948_v40  ;;  %v2621_v3 = vpop.f32.mrb[18].mxu0  ;;  %v3235_v51 = vadd.f32 %v3234_v29, %v6948_v40  ;;  %v3236_v15 = vpop.f32.mrb[70].mxu1 }
 0x415   : > { %v5129_v61 = vmax.f32 %v2618_v27, 0.0  ;;  %v2622_v22 = vpop.f32.mrb[19].mxu0  ;;  %v5159_v49 = vmax.f32 %v3233_v10, 0.0  ;;  %v3237_v18 = vpop.f32.mrb[71].mxu1 }
 0x416   : > { %v5130_v52 = vmax.f32 %v2620_v28, 0.0  ;;  %v5160_v32 = vmax.f32 %v3235_v51, 0.0  ;;  %v2430_v18 = vsel %vm2116_vm1, %v6793_v6, 0 }
 0x417   : > { %5257 = vst [vmem:[%s6960_s17 + $0x20] sm:$0xff] %v5129_v61  ;;  %5606 = vmatmul.mubr.msk.bf16.vlgmr.msra.gmra.mrb[124].mxu0 %vm2112_vm2, %v6887_v46  ;;  %5287 = vst [vmem:[%s6960_s17 + $0x110] sm:$0xff] %v5159_v49 }
 0x418   : > { %5258 = vst [vmem:[%s6960_s17 + $0x28] sm:$0xff] %v5130_v52  ;;  %4388 = vmatpush1.bf16.msra.mxu0 %v2394_v38  ;;  %4419 = vmatprep.mubr.bf16.mxu0 %v5926_v55  ;;  %5288 = vst [vmem:[%s6960_s17 + $0x118] sm:$0xff] %v5160_v32 }
 0x419   : > { %5613 = vmatprep.subr.msk.bf16.mxu0 %vm2116_vm1, %v6724_v37 }
 0x41a   : > { %v2658_v63 = vpop.f32.mrb[20].mxu0  ;;  %v3314_v16 = vpop.f32.mrb[72].mxu1 }
 0x41b   : > { %v2659_v23 = vadd.f32 %v2658_v63, %v6948_v40  ;;  %v2660_v31 = vpop.f32.mrb[21].mxu0  ;;  %v3315_v43 = vadd.f32 %v3314_v16, %v6948_v40  ;;  %v3316_v47 = vpop.f32.mrb[73].mxu1 }
 0x41c   : > { %v2661_v41 = vadd.f32 %v2660_v31, %v6948_v40  ;;  %v2662_v7 = vpop.f32.mrb[22].mxu0  ;;  %v3317_v37 = vadd.f32 %v3316_v47, %v6948_v40  ;;  %v3318_v21 = vpop.f32.mrb[74].mxu1 }
 0x41d   : > { %v5131_v13 = vmax.f32 %v2659_v23, 0.0  ;;  %v2663_v45 = vpop.f32.mrb[23].mxu0  ;;  %v5163_v17 = vmax.f32 %v3315_v43, 0.0  ;;  %v3319_v25 = vpop.f32.mrb[75].mxu1  ;;  %v2442_v21 = vsel %vm2116_vm1, %v6819_v35, 0 }
 0x41e   : > { %v5132_v60 = vmax.f32 %v2661_v41, 0.0  ;;  %v5164_v57 = vmax.f32 %v3317_v37, 0.0 }
 0x41f   : > { %5610 = vmatmul.mubr.msk.bf16.vlgmr.msra.gmra.mrb[128].mxu0 %vm2112_vm2, %v6887_v46  ;;  %5259 = vst [vmem:[%s6960_s17 + $0x30] sm:$0xff] %v5131_v13  ;;  %5291 = vst [vmem:[%s6960_s17 + $0x130] sm:$0xff] %v5163_v17 }
 0x420   : > { %4470 = vmatpush1.bf16.msra.mxu0 %v2406_v11  ;;  %4501 = vmatprep.mubr.bf16.mxu0 %v5926_v55  ;;  %5260 = vst [vmem:[%s6960_s17 + $0x38] sm:$0xff] %v5132_v60  ;;  %5292 = vst [vmem:[%s6960_s17 + $0x138] sm:$0xff] %v5164_v57 }
 0x421   : > { %5617 = vmatprep.subr.msk.bf16.mxu0 %vm2116_vm1, %v6751_v36 }
 0x422   : > { %v2699_v30 = vpop.f32.mrb[24].mxu0  ;;  %v3396_v56 = vpop.f32.mrb[76].mxu1 }
 0x423   : > { %v2700_v24 = vadd.f32 %v2699_v30, %v6948_v40  ;;  %v2701_v14 = vpop.f32.mrb[25].mxu0  ;;  %v3397_v53 = vadd.f32 %v3396_v56, %v6948_v40  ;;  %v3398_v39 = vpop.f32.mrb[77].mxu1 }
 0x424   : > { %v2702_v12 = vadd.f32 %v2701_v14, %v6948_v40  ;;  %v2703_v59 = vpop.f32.mrb[26].mxu0  ;;  %v3399_v27 = vadd.f32 %v3398_v39, %v6948_v40  ;;  %v3400_v26 = vpop.f32.mrb[78].mxu1 }
 0x425   : > { %v5133_v2 = vmax.f32 %v2700_v24, 0.0  ;;  %v2704_v62 = vpop.f32.mrb[27].mxu0  ;;  %v5167_v48 = vmax.f32 %v3397_v53, 0.0  ;;  %v3401_v28 = vpop.f32.mrb[79].mxu1 }
 0x426   : > { %v5134_v36 = vmax.f32 %v2702_v12, 0.0  ;;  %v5168_v3 = vmax.f32 %v3399_v27, 0.0 }
 0x427   : > { %5614 = vmatmul.mubr.msk.bf16.vlgmr.msra.gmra.mrb[132].mxu0 %vm2112_vm2, %v6887_v46  ;;  %5261 = vst [vmem:[%s6960_s17 + $0x40] sm:$0xff] %v5133_v2  ;;  %5295 = vst [vmem:[%s6960_s17 + $0x150] sm:$0xff] %v5167_v48 }
 0x428   : > { %4552 = vmatpush1.bf16.msra.mxu0 %v2418_v20  ;;  %4583 = vmatprep.mubr.bf16.mxu0 %v5926_v55  ;;  %5262 = vst [vmem:[%s6960_s17 + $0x48] sm:$0xff] %v5134_v36  ;;  %5296 = vst [vmem:[%s6960_s17 + $0x158] sm:$0xff] %v5168_v3  ;;  %v2454_v36 = vsel %vm2116_vm1, %v6837_v44, 0 }
 0x429   : > { %5621 = vmatprep.subr.msk.bf16.mxu0 %vm2116_vm1, %v6778_v19 }
 0x42a   : > { %v2740_v42 = vpop.f32.mrb[28].mxu0  ;;  %v3478_v52 = vpop.f32.mrb[80].mxu1 }
 0x42b   : > { %v2741_v54 = vadd.f32 %v2740_v42, %v6948_v40  ;;  %v2742_v61 = vpop.f32.mrb[29].mxu0  ;;  %v3479_v29 = vadd.f32 %v3478_v52, %v6948_v40  ;;  %v3480_v51 = vpop.f32.mrb[81].mxu1 }
 0x42c   : > { %v2743_v9 = vadd.f32 %v2742_v61, %v6948_v40  ;;  %v2744_v22 = vpop.f32.mrb[30].mxu0  ;;  %v3481_v15 = vadd.f32 %v3480_v51, %v6948_v40  ;;  %v3482_v49 = vpop.f32.mrb[82].mxu1 }
 0x42d   : > { %v5135_v4 = vmax.f32 %v2741_v54, 0.0  ;;  %v2745_v10 = vpop.f32.mrb[31].mxu0  ;;  %v5171_v32 = vmax.f32 %v3479_v29, 0.0  ;;  %v3483_v38 = vpop.f32.mrb[83].mxu1  ;;  %v2466_v29 = vsel %vm2116_vm1, %v6867_v33, 0 }
 0x42e   : > { %v5136_v19 = vmax.f32 %v2743_v9, 0.0  ;;  %v5172_v63 = vmax.f32 %v3481_v15, 0.0 }
 0x42f   : > { %5618 = vmatmul.mubr.msk.bf16.vlgmr.msra.gmra.mrb[136].mxu0 %vm2112_vm2, %v6887_v46  ;;  %5263 = vst [vmem:[%s6960_s17 + $0x50] sm:$0xff] %v5135_v4  ;;  %5299 = vst [vmem:[%s6960_s17 + $0x170] sm:$0xff] %v5171_v32 }
 0x430   : > { %4634 = vmatpush1.bf16.msra.mxu0 %v2430_v18  ;;  %4665 = vmatprep.mubr.bf16.mxu0 %v5926_v55  ;;  %5264 = vst [vmem:[%s6960_s17 + $0x58] sm:$0xff] %v5136_v19  ;;  %5300 = vst [vmem:[%s6960_s17 + $0x178] sm:$0xff] %v5172_v63 }
 0x431   : > { %5625 = vmatprep.subr.msk.bf16.mxu0 %vm2116_vm1, %v6801_v34 }
 0x432   : > { %v2781_v23 = vpop.f32.mrb[32].mxu0  ;;  %v3560_v16 = vpop.f32.mrb[84].mxu1 }
 0x433   : > { %v2782_v31 = vadd.f32 %v2781_v23, %v6948_v40  ;;  %v2783_v41 = vpop.f32.mrb[33].mxu0  ;;  %v3561_v43 = vadd.f32 %v3560_v16, %v6948_v40  ;;  %v3562_v47 = vpop.f32.mrb[85].mxu1 }
 0x434   : > { %v2784_v6 = vadd.f32 %v2783_v41, %v6948_v40  ;;  %v2785_v7 = vpop.f32.mrb[34].mxu0  ;;  %v3563_v60 = vadd.f32 %v3562_v47, %v6948_v40  ;;  %v3564_v37 = vpop.f32.mrb[86].mxu1 }
 0x435   : > { %v5137_v13 = vmax.f32 %v2782_v31, 0.0  ;;  %v2786_v45 = vpop.f32.mrb[35].mxu0  ;;  %v5175_v11 = vmax.f32 %v3561_v43, 0.0  ;;  %v3565_v17 = vpop.f32.mrb[87].mxu1 }
 0x436   : > { %v5138_v34 = vmax.f32 %v2784_v6, 0.0  ;;  %v5176_v25 = vmax.f32 %v3563_v60, 0.0 }
 0x437   : > { %5622 = vmatmul.mubr.msk.bf16.vlgmr.msra.gmra.mrb[140].mxu0 %vm2112_vm2, %v6887_v46  ;;  %5265 = vst [vmem:[%s6960_s17 + $0x60] sm:$0xff] %v5137_v13  ;;  %5303 = vst [vmem:[%s6960_s17 + $0x190] sm:$0xff] %v5175_v11  ;;  %v2478_v13 = vsel %vm2116_vm1, %v6902_v1, 0 }
 0x438   : > { %4716 = vmatpush1.bf16.msra.mxu0 %v2442_v21  ;;  %4747 = vmatprep.mubr.bf16.mxu0 %v5926_v55  ;;  %5266 = vst [vmem:[%s6960_s17 + $0x68] sm:$0xff] %v5138_v34  ;;  %5304 = vst [vmem:[%s6960_s17 + $0x198] sm:$0xff] %v5176_v25 }
 0x439   : > { %5629 = vmatprep.subr.msk.bf16.mxu0 %vm2116_vm1, %v6826_v50 }
 0x43a   : > { %v2822_v57 = vpop.f32.mrb[36].mxu0  ;;  %v3642_v12 = vpop.f32.mrb[88].mxu1 }
 0x43b   : > { %v2823_v30 = vadd.f32 %v2822_v57, %v6948_v40  ;;  %v2824_v24 = vpop.f32.mrb[37].mxu0  ;;  %v3643_v2 = vadd.f32 %v3642_v12, %v6948_v40  ;;  %v3644_v62 = vpop.f32.mrb[89].mxu1 }
 0x43c   : > { %v2825_v35 = vadd.f32 %v2824_v24, %v6948_v40  ;;  %v2826_v14 = vpop.f32.mrb[38].mxu0  ;;  %v3645_v53 = vadd.f32 %v3644_v62, %v6948_v40  ;;  %v3646_v39 = vpop.f32.mrb[90].mxu1 }
 0x43d   : > { %v5139_v59 = vmax.f32 %v2823_v30, 0.0  ;;  %v2827_v56 = vpop.f32.mrb[39].mxu0  ;;  %v5179_v27 = vmax.f32 %v3643_v2, 0.0  ;;  %v3647_v26 = vpop.f32.mrb[91].mxu1  ;;  %v2490_v14 = vsel %vm2116_vm1, %v6924_v8, 0 }
 0x43e   : > { %v5140_v50 = vmax.f32 %v2825_v35, 0.0  ;;  %v5180_v20 = vmax.f32 %v3645_v53, 0.0 }
 0x43f   : > { %5626 = vmatmul.mubr.msk.bf16.vlgmr.msra.gmra.mrb[144].mxu0 %vm2112_vm2, %v6887_v46  ;;  %5267 = vst [vmem:[%s6960_s17 + $0x70] sm:$0xff] %v5139_v59  ;;  %5307 = vst [vmem:[%s6960_s17 + $0x1b0] sm:$0xff] %v5179_v27 }
 0x440   : > { %4798 = vmatpush1.bf16.msra.mxu0 %v2454_v36  ;;  %4829 = vmatprep.mubr.bf16.mxu0 %v5926_v55  ;;  %5268 = vst [vmem:[%s6960_s17 + $0x78] sm:$0xff] %v5140_v50  ;;  %5308 = vst [vmem:[%s6960_s17 + $0x1b8] sm:$0xff] %v5180_v20 }
 0x441   : > { %5633 = vmatprep.subr.msk.bf16.mxu0 %vm2116_vm1, %v6853_v0 }
 0x442   : > { %v2863_v48 = vpop.f32.mrb[40].mxu0  ;;  %v3724_v54 = vpop.f32.mrb[92].mxu1 }
 0x443   : > { %v2864_v28 = vadd.f32 %v2863_v48, %v6948_v40  ;;  %v2865_v3 = vpop.f32.mrb[41].mxu0  ;;  %v3725_v22 = vadd.f32 %v3724_v54, %v6948_v40  ;;  %v3726_v52 = vpop.f32.mrb[93].mxu1 }
 0x444   : > { %v2866_v44 = vadd.f32 %v2865_v3, %v6948_v40  ;;  %v2867_v42 = vpop.f32.mrb[42].mxu0  ;;  %v3727_v4 = vadd.f32 %v3726_v52, %v6948_v40  ;;  %v3728_v10 = vpop.f32.mrb[94].mxu1 }
 0x445   : > { %v5141_v61 = vmax.f32 %v2864_v28, 0.0  ;;  %v2868_v9 = vpop.f32.mrb[43].mxu0  ;;  %v5183_v51 = vmax.f32 %v3725_v22, 0.0  ;;  %v3729_v19 = vpop.f32.mrb[95].mxu1 }
 0x446   : > { %v5142_v0 = vmax.f32 %v2866_v44, 0.0  ;;  %v5184_v15 = vmax.f32 %v3727_v4, 0.0 }
 0x447   : > { %5630 = vmatmul.mubr.msk.bf16.vlgmr.msra.gmra.mrb[148].mxu0 %vm2112_vm2, %v6887_v46  ;;  %5269 = vst [vmem:[%s6960_s17 + $0x80] sm:$0xff] %v5141_v61  ;;  %5311 = vst [vmem:[%s6960_s17 + $0x1d0] sm:$0xff] %v5183_v51 }
 0x448   : > { %4880 = vmatpush1.bf16.msra.mxu0 %v2466_v29  ;;  %4911 = vmatprep.mubr.bf16.mxu0 %v5926_v55  ;;  %5270 = vst [vmem:[%s6960_s17 + $0x88] sm:$0xff] %v5142_v0  ;;  %5312 = vst [vmem:[%s6960_s17 + $0x1d8] sm:$0xff] %v5184_v15 }
 0x449   : > { %5637 = vmatprep.subr.msk.bf16.mxu0 %vm2116_vm1, %v6882_v58 }
 0x44a   : > { %v2904_v49 = vpop.f32.mrb[44].mxu0  ;;  %v3806_v63 = vpop.f32.mrb[96].mxu1 }
 0x44b   : > { %v2905_v18 = vadd.f32 %v2904_v49, %v6948_v40  ;;  %v2906_v32 = vpop.f32.mrb[45].mxu0  ;;  %v3807_v41 = vadd.f32 %v3806_v63, %v6948_v40  ;;  %v3808_v6 = vpop.f32.mrb[97].mxu1 }
 0x44c   : > { %v2907_v33 = vadd.f32 %v2906_v32, %v6948_v40  ;;  %v2908_v38 = vpop.f32.mrb[46].mxu0  ;;  %v3809_v7 = vadd.f32 %v3808_v6, %v6948_v40  ;;  %v3810_v16 = vpop.f32.mrb[98].mxu1 }
 0x44d   : > { %v5143_v23 = vmax.f32 %v2905_v18, 0.0  ;;  %v2909_v31 = vpop.f32.mrb[47].mxu0  ;;  %v5187_v45 = vmax.f32 %v3807_v41, 0.0  ;;  %v3811_v43 = vpop.f32.mrb[99].mxu1 }
 0x44e   : > { %v5144_v58 = vmax.f32 %v2907_v33, 0.0  ;;  %v5188_v47 = vmax.f32 %v3809_v7, 0.0 }
 0x44f   : > { %5634 = vmatmul.mubr.msk.bf16.vlgmr.msra.gmra.mrb[152].mxu0 %vm2112_vm2, %v6887_v46  ;;  %5271 = vst [vmem:[%s6960_s17 + $0x90] sm:$0xff] %v5143_v23  ;;  %5315 = vst [vmem:[%s6960_s17 + $0x1f0] sm:$0xff] %v5187_v45 }
 0x450   : > { %4962 = vmatpush1.bf16.msra.mxu0 %v2478_v13  ;;  %4993 = vmatprep.mubr.bf16.mxu0 %v5926_v55  ;;  %5272 = vst [vmem:[%s6960_s17 + $0x98] sm:$0xff] %v5144_v58  ;;  %5316 = vst [vmem:[%s6960_s17 + $0x1f8] sm:$0xff] %v5188_v47 }
 0x451   : > { %5641 = vmatprep.subr.msk.bf16.mxu0 %vm2116_vm1, %v6909_v5 }
 0x452   : > { %v2945_v34 = vpop.f32.mrb[48].mxu0  ;;  %v3888_v11 = vpop.f32.mrb[100].mxu1 }
 0x453   : > { %v2946_v60 = vadd.f32 %v2945_v34, %v6948_v40  ;;  %v2947_v37 = vpop.f32.mrb[49].mxu0  ;;  %v3889_v57 = vadd.f32 %v3888_v11, %v6948_v40  ;;  %v3890_v30 = vpop.f32.mrb[101].mxu1 }
 0x454   : > { %v2948_v1 = vadd.f32 %v2947_v37, %v6948_v40  ;;  %v2949_v21 = vpop.f32.mrb[50].mxu0  ;;  %v3891_v24 = vadd.f32 %v3890_v30, %v6948_v40  ;;  %v3892_v35 = vpop.f32.mrb[102].mxu1 }
 0x455   : > { %v5145_v17 = vmax.f32 %v2946_v60, 0.0  ;;  %v2950_v25 = vpop.f32.mrb[51].mxu0  ;;  %v5191_v12 = vmax.f32 %v3889_v57, 0.0  ;;  %v3893_v59 = vpop.f32.mrb[103].mxu1 }
 0x456   : > { %v5146_v5 = vmax.f32 %v2948_v1, 0.0  ;;  %v5192_v56 = vmax.f32 %v3891_v24, 0.0 }
 0x457   : > { %5638 = vmatmul.mubr.msk.bf16.vlgmr.msra.gmra.mrb[156].mxu0 %vm2112_vm2, %v6887_v46  ;;  %5273 = vst [vmem:[%s6960_s17 + $0xa0] sm:$0xff] %v5145_v17  ;;  %5319 = vst [vmem:[%s6960_s17 + $0x210] sm:$0xff] %v5191_v12 }
 0x458   : > { %5044 = vmatpush1.bf16.msra.mxu0 %v2490_v14  ;;  %5274 = vst [vmem:[%s6960_s17 + $0xa8] sm:$0xff] %v5146_v5  ;;  %5075 = vmatprep.mubr.bf16.mxu0 %v5926_v55  ;;  %5320 = vst [vmem:[%s6960_s17 + $0x218] sm:$0xff] %v5192_v56 }
 0x45a   : > { %v2986_v2 = vpop.f32.mrb[52].mxu0  ;;  %v3970_v39 = vpop.f32.mrb[104].mxu1 }
 0x45b   : > { %v2987_v62 = vadd.f32 %v2986_v2, %v6948_v40  ;;  %v2988_v50 = vpop.f32.mrb[53].mxu0  ;;  %v3971_v26 = vadd.f32 %v3970_v39, %v6948_v40  ;;  %v3972_v55 = vpop.f32.mrb[105].mxu1 }
 0x45c   : > { %v2989_v53 = vadd.f32 %v2988_v50, %v6948_v40  ;;  %v2990_v8 = vpop.f32.mrb[54].mxu0  ;;  %v3973_v48 = vadd.f32 %v3972_v55, %v6948_v40  ;;  %v3974_v28 = vpop.f32.mrb[106].mxu1 }
 0x45d   : > { %v5147_v36 = vmax.f32 %v2987_v62, 0.0  ;;  %v2991_v27 = vpop.f32.mrb[55].mxu0  ;;  %v5195_v3 = vmax.f32 %v3971_v26, 0.0  ;;  %v3975_v44 = vpop.f32.mrb[107].mxu1 }
 0x45e   : > { %v5148_v20 = vmax.f32 %v2989_v53, 0.0  ;;  %v5196_v42 = vmax.f32 %v3973_v48, 0.0 }
 0x45f   : > { %5275 = vst [vmem:[%s6960_s17 + $0xb0] sm:$0xff] %v5147_v36  ;;  %5642 = vmatmul.mubr.msk.bf16.vlgmr.msra.gmra.mrb[160].mxu0 %vm2112_vm2, %v6887_v46  ;;  %5323 = vst [vmem:[%s6960_s17 + $0x230] sm:$0xff] %v5195_v3 }
 0x460   : > { %5276 = vst [vmem:[%s6960_s17 + $0xb8] sm:$0xff] %v5148_v20  ;;  %5324 = vst [vmem:[%s6960_s17 + $0x238] sm:$0xff] %v5196_v42 }
 0x462   : > { %v3027_v54 = vpop.f32.mrb[56].mxu0  ;;  %v4052_v0 = vpop.f32.mrb[108].mxu1 }
 0x463   : > { %v3028_v61 = vadd.f32 %v3027_v54, %v6948_v40  ;;  %v3029_v9 = vpop.f32.mrb[57].mxu0  ;;  %v4053_v10 = vadd.f32 %v4052_v0, %v6948_v40  ;;  %v4054_v29 = vpop.f32.mrb[109].mxu1 }
 0x464   : > { %v3030_v22 = vadd.f32 %v3029_v9, %v6948_v40  ;;  %v3031_v52 = vpop.f32.mrb[58].mxu0  ;;  %v4055_v19 = vadd.f32 %v4054_v29, %v6948_v40  ;;  %v4056_v15 = vpop.f32.mrb[110].mxu1 }
 0x465   : > { %v5149_v4 = vmax.f32 %v3028_v61, 0.0  ;;  %v3032_v46 = vpop.f32.mrb[59].mxu0  ;;  %v5199_v49 = vmax.f32 %v4053_v10, 0.0  ;;  %v4057_v18 = vpop.f32.mrb[111].mxu1 }
 0x466   : > { %v5150_v51 = vmax.f32 %v3030_v22, 0.0  ;;  %v5200_v32 = vmax.f32 %v4055_v19, 0.0 }
 0x467   : > { %5277 = vst [vmem:[%s6960_s17 + $0xc0] sm:$0xff] %v5149_v4  ;;  %5327 = vst [vmem:[%s6960_s17 + $0x250] sm:$0xff] %v5199_v49 }
 0x468   : > { %5278 = vst [vmem:[%s6960_s17 + $0xc8] sm:$0xff] %v5150_v51  ;;  %5328 = vst [vmem:[%s6960_s17 + $0x258] sm:$0xff] %v5200_v32 }
 0x46a   : > { %v3068_v33 = vpop.f32.mrb[60].mxu0  ;;  %v4134_v41 = vpop.f32.mrb[112].mxu1 }
 0x46b   : > { %v3069_v38 = vadd.f32 %v3068_v33, %v6948_v40  ;;  %v3070_v63 = vpop.f32.mrb[61].mxu0  ;;  %v4135_v7 = vadd.f32 %v4134_v41, %v6948_v40  ;;  %v4136_v16 = vpop.f32.mrb[113].mxu1 }
 0x46c   : > { %v3071_v23 = vadd.f32 %v3070_v63, %v6948_v40  ;;  %v3072_v31 = vpop.f32.mrb[62].mxu0  ;;  %v4137_v45 = vadd.f32 %v4136_v16, %v6948_v40  ;;  %v4138_v43 = vpop.f32.mrb[114].mxu1 }
 0x46d   : > { %v5151_v6 = vmax.f32 %v3069_v38, 0.0  ;;  %v3073_v58 = vpop.f32.mrb[63].mxu0  ;;  %v5203_v47 = vmax.f32 %v4135_v7, 0.0  ;;  %v4139_v34 = vpop.f32.mrb[115].mxu1 }
 0x46e   : > { %v5152_v13 = vmax.f32 %v3071_v23, 0.0  ;;  %v5204_v60 = vmax.f32 %v4137_v45, 0.0 }
 0x46f   : > { %5279 = vst [vmem:[%s6960_s17 + $0xd0] sm:$0xff] %v5151_v6  ;;  %5331 = vst [vmem:[%s6960_s17 + $0x270] sm:$0xff] %v5203_v47 }
 0x470   : > { %5280 = vst [vmem:[%s6960_s17 + $0xd8] sm:$0xff] %v5152_v13  ;;  %5332 = vst [vmem:[%s6960_s17 + $0x278] sm:$0xff] %v5204_v60 }
 0x472   : > { %v3109_v37 = vpop.f32.mrb[64].mxu0  ;;  %v4216_v25 = vpop.f32.mrb[116].mxu1 }
 0x473   : > { %v3110_v1 = vadd.f32 %v3109_v37, %v6948_v40  ;;  %v3111_v21 = vpop.f32.mrb[65].mxu0  ;;  %v4217_v5 = vadd.f32 %v4216_v25, %v6948_v40  ;;  %v4218_v24 = vpop.f32.mrb[117].mxu1 }
 0x474   : > { %v3112_v11 = vadd.f32 %v3111_v21, %v6948_v40  ;;  %v3113_v17 = vpop.f32.mrb[66].mxu0  ;;  %v4219_v14 = vadd.f32 %v4218_v24, %v6948_v40  ;;  %v4220_v12 = vpop.f32.mrb[118].mxu1 }
 0x475   : > { %v5153_v57 = vmax.f32 %v3110_v1, 0.0  ;;  %v3114_v30 = vpop.f32.mrb[67].mxu0  ;;  %v5207_v59 = vmax.f32 %v4217_v5, 0.0  ;;  %v4221_v56 = vpop.f32.mrb[119].mxu1 }
 0x476   : > { %v5154_v35 = vmax.f32 %v3112_v11, 0.0  ;;  %v5208_v2 = vmax.f32 %v4219_v14, 0.0 }
 0x477   : > { %5281 = vst [vmem:[%s6960_s17 + $0xe0] sm:$0xff] %v5153_v57  ;;  %5335 = vst [vmem:[%s6960_s17 + $0x290] sm:$0xff] %v5207_v59 }
 0x478   : > { %5282 = vst [vmem:[%s6960_s17 + $0xe8] sm:$0xff] %v5154_v35  ;;  %5336 = vst [vmem:[%s6960_s17 + $0x298] sm:$0xff] %v5208_v2 }
 0x47a   : > { %v3191_v62 = vpop.f32.mrb[68].mxu0  ;;  %v4298_v36 = vpop.f32.mrb[120].mxu1 }
 0x47b   : > { %v3192_v50 = vadd.f32 %v3191_v62, %v6948_v40  ;;  %v3193_v53 = vpop.f32.mrb[69].mxu0  ;;  %v4299_v55 = vadd.f32 %v4298_v36, %v6948_v40  ;;  %v4300_v20 = vpop.f32.mrb[121].mxu1 }
 0x47c   : > { %v3194_v8 = vadd.f32 %v3193_v53, %v6948_v40  ;;  %v3195_v39 = vpop.f32.mrb[70].mxu0  ;;  %v4301_v28 = vadd.f32 %v4300_v20, %v6948_v40  ;;  %v4302_v3 = vpop.f32.mrb[122].mxu1 }
 0x47d   : > { %v5157_v27 = vmax.f32 %v3192_v50, 0.0  ;;  %v3196_v26 = vpop.f32.mrb[71].mxu0  ;;  %v5211_v44 = vmax.f32 %v4299_v55, 0.0  ;;  %v4303_v42 = vpop.f32.mrb[123].mxu1 }
 0x47e   : > { %v5158_v48 = vmax.f32 %v3194_v8, 0.0  ;;  %v5212_v54 = vmax.f32 %v4301_v28, 0.0 }
 0x47f   : > { %5285 = vst [vmem:[%s6960_s17 + $0x100] sm:$0xff] %v5157_v27  ;;  %5339 = vst [vmem:[%s6960_s17 + $0x2b0] sm:$0xff] %v5211_v44 }
 0x480   : > { %5286 = vst [vmem:[%s6960_s17 + $0x108] sm:$0xff] %v5158_v48  ;;  %5340 = vst [vmem:[%s6960_s17 + $0x2b8] sm:$0xff] %v5212_v54 }
 0x482   : > { %v3273_v61 = vpop.f32.mrb[72].mxu0  ;;  %v4380_v4 = vpop.f32.mrb[124].mxu1 }
 0x483   : > { %v3274_v9 = vadd.f32 %v3273_v61, %v6948_v40  ;;  %v3275_v22 = vpop.f32.mrb[73].mxu0  ;;  %v4381_v29 = vadd.f32 %v4380_v4, %v6948_v40  ;;  %v4382_v51 = vpop.f32.mrb[125].mxu1 }
 0x484   : > { %v3276_v52 = vadd.f32 %v3275_v22, %v6948_v40  ;;  %v3277_v0 = vpop.f32.mrb[74].mxu0  ;;  %v4383_v15 = vadd.f32 %v4382_v51, %v6948_v40  ;;  %v4384_v49 = vpop.f32.mrb[126].mxu1 }
 0x485   : > { %v5161_v46 = vmax.f32 %v3274_v9, 0.0  ;;  %v3278_v10 = vpop.f32.mrb[75].mxu0  ;;  %v5215_v18 = vmax.f32 %v4381_v29, 0.0  ;;  %v4385_v32 = vpop.f32.mrb[127].mxu1 }
 0x486   : > { %v5162_v19 = vmax.f32 %v3276_v52, 0.0  ;;  %v5216_v33 = vmax.f32 %v4383_v15, 0.0 }
 0x487   : > { %5289 = vst [vmem:[%s6960_s17 + $0x120] sm:$0xff] %v5161_v46  ;;  %5343 = vst [vmem:[%s6960_s17 + $0x2d0] sm:$0xff] %v5215_v18 }
 0x488   : > { %5290 = vst [vmem:[%s6960_s17 + $0x128] sm:$0xff] %v5162_v19  ;;  %5344 = vst [vmem:[%s6960_s17 + $0x2d8] sm:$0xff] %v5216_v33 }
 0x48a   : > { %v3355_v38 = vpop.f32.mrb[76].mxu0  ;;  %v4462_v6 = vpop.f32.mrb[128].mxu1 }
 0x48b   : > { %v3356_v63 = vadd.f32 %v3355_v38, %v6948_v40  ;;  %v3357_v23 = vpop.f32.mrb[77].mxu0  ;;  %v4463_v16 = vadd.f32 %v4462_v6, %v6948_v40  ;;  %v4464_v13 = vpop.f32.mrb[129].mxu1 }
 0x48c   : > { %v3358_v31 = vadd.f32 %v3357_v23, %v6948_v40  ;;  %v3359_v41 = vpop.f32.mrb[78].mxu0  ;;  %v4465_v43 = vadd.f32 %v4464_v13, %v6948_v40  ;;  %v4466_v47 = vpop.f32.mrb[130].mxu1 }
 0x48d   : > { %v5165_v58 = vmax.f32 %v3356_v63, 0.0  ;;  %v3360_v7 = vpop.f32.mrb[79].mxu0  ;;  %v5219_v34 = vmax.f32 %v4463_v16, 0.0  ;;  %v4467_v60 = vpop.f32.mrb[131].mxu1 }
 0x48e   : > { %v5166_v45 = vmax.f32 %v3358_v31, 0.0  ;;  %v5220_v37 = vmax.f32 %v4465_v43, 0.0 }
 0x48f   : > { %5293 = vst [vmem:[%s6960_s17 + $0x140] sm:$0xff] %v5165_v58  ;;  %5347 = vst [vmem:[%s6960_s17 + $0x2f0] sm:$0xff] %v5219_v34 }
 0x490   : > { %5294 = vst [vmem:[%s6960_s17 + $0x148] sm:$0xff] %v5166_v45  ;;  %5348 = vst [vmem:[%s6960_s17 + $0x2f8] sm:$0xff] %v5220_v37 }
 0x492   : > { %v3437_v1 = vpop.f32.mrb[80].mxu0  ;;  %v4544_v57 = vpop.f32.mrb[132].mxu1 }
 0x493   : > { %v3438_v21 = vadd.f32 %v3437_v1, %v6948_v40  ;;  %v3439_v11 = vpop.f32.mrb[81].mxu0  ;;  %v4545_v24 = vadd.f32 %v4544_v57, %v6948_v40  ;;  %v4546_v35 = vpop.f32.mrb[133].mxu1 }
 0x494   : > { %v3440_v17 = vadd.f32 %v3439_v11, %v6948_v40  ;;  %v3441_v25 = vpop.f32.mrb[82].mxu0  ;;  %v4547_v12 = vadd.f32 %v4546_v35, %v6948_v40  ;;  %v4548_v59 = vpop.f32.mrb[134].mxu1 }
 0x495   : > { %v5169_v30 = vmax.f32 %v3438_v21, 0.0  ;;  %v3442_v5 = vpop.f32.mrb[83].mxu0  ;;  %v5223_v56 = vmax.f32 %v4545_v24, 0.0  ;;  %v4549_v2 = vpop.f32.mrb[135].mxu1 }
 0x496   : > { %v5170_v14 = vmax.f32 %v3440_v17, 0.0  ;;  %v5224_v62 = vmax.f32 %v4547_v12, 0.0 }
 0x497   : > { %5297 = vst [vmem:[%s6960_s17 + $0x160] sm:$0xff] %v5169_v30  ;;  %5351 = vst [vmem:[%s6960_s17 + $0x310] sm:$0xff] %v5223_v56 }
 0x498   : > { %5298 = vst [vmem:[%s6960_s17 + $0x168] sm:$0xff] %v5170_v14  ;;  %5352 = vst [vmem:[%s6960_s17 + $0x318] sm:$0xff] %v5224_v62 }
 0x49a   : > { %v3519_v50 = vpop.f32.mrb[84].mxu0  ;;  %v4626_v27 = vpop.f32.mrb[136].mxu1 }
 0x49b   : > { %v3520_v53 = vadd.f32 %v3519_v50, %v6948_v40  ;;  %v3521_v8 = vpop.f32.mrb[85].mxu0  ;;  %v4627_v20 = vadd.f32 %v4626_v27, %v6948_v40  ;;  %v4628_v48 = vpop.f32.mrb[137].mxu1 }
 0x49c   : > { %v3522_v39 = vadd.f32 %v3521_v8, %v6948_v40  ;;  %v3523_v36 = vpop.f32.mrb[86].mxu0  ;;  %v4629_v3 = vadd.f32 %v4628_v48, %v6948_v40  ;;  %v4630_v44 = vpop.f32.mrb[138].mxu1 }
 0x49d   : > { %v5173_v26 = vmax.f32 %v3520_v53, 0.0  ;;  %v3524_v55 = vpop.f32.mrb[87].mxu0  ;;  %v5227_v42 = vmax.f32 %v4627_v20, 0.0  ;;  %v4631_v54 = vpop.f32.mrb[139].mxu1 }
 0x49e   : > { %v5174_v28 = vmax.f32 %v3522_v39, 0.0  ;;  %v5228_v61 = vmax.f32 %v4629_v3, 0.0 }
 0x49f   : > { %5301 = vst [vmem:[%s6960_s17 + $0x180] sm:$0xff] %v5173_v26  ;;  %5355 = vst [vmem:[%s6960_s17 + $0x330] sm:$0xff] %v5227_v42 }
 0x4a0   : > { %5302 = vst [vmem:[%s6960_s17 + $0x188] sm:$0xff] %v5174_v28  ;;  %5356 = vst [vmem:[%s6960_s17 + $0x338] sm:$0xff] %v5228_v61 }
 0x4a2   : > { %v3601_v9 = vpop.f32.mrb[88].mxu0  ;;  %v4708_v46 = vpop.f32.mrb[140].mxu1 }
 0x4a3   : > { %v3602_v22 = vadd.f32 %v3601_v9, %v6948_v40  ;;  %v3603_v52 = vpop.f32.mrb[89].mxu0  ;;  %v4709_v51 = vadd.f32 %v4708_v46, %v6948_v40  ;;  %v4710_v19 = vpop.f32.mrb[141].mxu1 }
 0x4a4   : > { %v3604_v0 = vadd.f32 %v3603_v52, %v6948_v40  ;;  %v3605_v4 = vpop.f32.mrb[90].mxu0  ;;  %v4711_v49 = vadd.f32 %v4710_v19, %v6948_v40  ;;  %v4712_v18 = vpop.f32.mrb[142].mxu1 }
 0x4a5   : > { %v5177_v10 = vmax.f32 %v3602_v22, 0.0  ;;  %v3606_v29 = vpop.f32.mrb[91].mxu0  ;;  %v5231_v32 = vmax.f32 %v4709_v51, 0.0  ;;  %v4713_v33 = vpop.f32.mrb[143].mxu1 }
 0x4a6   : > { %v5178_v15 = vmax.f32 %v3604_v0, 0.0  ;;  %v5232_v38 = vmax.f32 %v4711_v49, 0.0 }
 0x4a7   : > { %5305 = vst [vmem:[%s6960_s17 + $0x1a0] sm:$0xff] %v5177_v10  ;;  %5359 = vst [vmem:[%s6960_s17 + $0x350] sm:$0xff] %v5231_v32 }
 0x4a8   : > { %5306 = vst [vmem:[%s6960_s17 + $0x1a8] sm:$0xff] %v5178_v15  ;;  %5360 = vst [vmem:[%s6960_s17 + $0x358] sm:$0xff] %v5232_v38 }
 0x4aa   : > { %v3683_v63 = vpop.f32.mrb[92].mxu0  ;;  %v4790_v58 = vpop.f32.mrb[144].mxu1 }
 0x4ab   : > { %v3684_v23 = vadd.f32 %v3683_v63, %v6948_v40  ;;  %v3685_v31 = vpop.f32.mrb[93].mxu0  ;;  %v4791_v13 = vadd.f32 %v4790_v58, %v6948_v40  ;;  %v4792_v45 = vpop.f32.mrb[145].mxu1 }
 0x4ac   : > { %v3686_v41 = vadd.f32 %v3685_v31, %v6948_v40  ;;  %v3687_v6 = vpop.f32.mrb[94].mxu0  ;;  %v4793_v47 = vadd.f32 %v4792_v45, %v6948_v40  ;;  %v4794_v34 = vpop.f32.mrb[146].mxu1 }
 0x4ad   : > { %v5181_v7 = vmax.f32 %v3684_v23, 0.0  ;;  %v3688_v16 = vpop.f32.mrb[95].mxu0  ;;  %v5235_v60 = vmax.f32 %v4791_v13, 0.0  ;;  %v4795_v37 = vpop.f32.mrb[147].mxu1 }
 0x4ae   : > { %v5182_v43 = vmax.f32 %v3686_v41, 0.0  ;;  %v5236_v1 = vmax.f32 %v4793_v47, 0.0 }
 0x4af   : > { %5309 = vst [vmem:[%s6960_s17 + $0x1c0] sm:$0xff] %v5181_v7  ;;  %5363 = vst [vmem:[%s6960_s17 + $0x370] sm:$0xff] %v5235_v60 }
 0x4b0   : > { %5310 = vst [vmem:[%s6960_s17 + $0x1c8] sm:$0xff] %v5182_v43  ;;  %5364 = vst [vmem:[%s6960_s17 + $0x378] sm:$0xff] %v5236_v1 }
 0x4b2   : > { %v3765_v21 = vpop.f32.mrb[96].mxu0  ;;  %v4872_v30 = vpop.f32.mrb[148].mxu1 }
 0x4b3   : > { %v3766_v11 = vadd.f32 %v3765_v21, %v6948_v40  ;;  %v3767_v17 = vpop.f32.mrb[97].mxu0  ;;  %v4873_v35 = vadd.f32 %v4872_v30, %v6948_v40  ;;  %v4874_v14 = vpop.f32.mrb[149].mxu1 }
 0x4b4   : > { %v3768_v25 = vadd.f32 %v3767_v17, %v6948_v40  ;;  %v3769_v57 = vpop.f32.mrb[98].mxu0  ;;  %v4875_v59 = vadd.f32 %v4874_v14, %v6948_v40  ;;  %v4876_v56 = vpop.f32.mrb[150].mxu1 }
 0x4b5   : > { %v5185_v5 = vmax.f32 %v3766_v11, 0.0  ;;  %v3770_v24 = vpop.f32.mrb[99].mxu0  ;;  %v5239_v2 = vmax.f32 %v4873_v35, 0.0  ;;  %v4877_v62 = vpop.f32.mrb[151].mxu1 }
 0x4b6   : > { %v5186_v12 = vmax.f32 %v3768_v25, 0.0  ;;  %v5240_v50 = vmax.f32 %v4875_v59, 0.0 }
 0x4b7   : > { %5313 = vst [vmem:[%s6960_s17 + $0x1e0] sm:$0xff] %v5185_v5  ;;  %5367 = vst [vmem:[%s6960_s17 + $0x390] sm:$0xff] %v5239_v2 }
 0x4b8   : > { %5314 = vst [vmem:[%s6960_s17 + $0x1e8] sm:$0xff] %v5186_v12  ;;  %5368 = vst [vmem:[%s6960_s17 + $0x398] sm:$0xff] %v5240_v50 }
 0x4ba   : > { %v3847_v53 = vpop.f32.mrb[100].mxu0  ;;  %v4954_v26 = vpop.f32.mrb[152].mxu1 }
 0x4bb   : > { %v3848_v8 = vadd.f32 %v3847_v53, %v6948_v40  ;;  %v3849_v39 = vpop.f32.mrb[101].mxu0  ;;  %v4955_v48 = vadd.f32 %v4954_v26, %v6948_v40  ;;  %v4956_v28 = vpop.f32.mrb[153].mxu1 }
 0x4bc   : > { %v3850_v36 = vadd.f32 %v3849_v39, %v6948_v40  ;;  %v3851_v27 = vpop.f32.mrb[102].mxu0  ;;  %v4957_v44 = vadd.f32 %v4956_v28, %v6948_v40  ;;  %v4958_v42 = vpop.f32.mrb[154].mxu1 }
 0x4bd   : > { %v5189_v55 = vmax.f32 %v3848_v8, 0.0  ;;  %v3852_v20 = vpop.f32.mrb[103].mxu0  ;;  %v5243_v54 = vmax.f32 %v4955_v48, 0.0  ;;  %v4959_v61 = vpop.f32.mrb[155].mxu1 }
 0x4be   : > { %v5190_v3 = vmax.f32 %v3850_v36, 0.0  ;;  %v5244_v9 = vmax.f32 %v4957_v44, 0.0 }
 0x4bf   : > { %5317 = vst [vmem:[%s6960_s17 + $0x200] sm:$0xff] %v5189_v55  ;;  %5371 = vst [vmem:[%s6960_s17 + $0x3b0] sm:$0xff] %v5243_v54 }
 0x4c0   : > { %5318 = vst [vmem:[%s6960_s17 + $0x208] sm:$0xff] %v5190_v3  ;;  %5372 = vst [vmem:[%s6960_s17 + $0x3b8] sm:$0xff] %v5244_v9 }
 0x4c2   : > { %v3929_v22 = vpop.f32.mrb[104].mxu0  ;;  %v5036_v10 = vpop.f32.mrb[156].mxu1 }
 0x4c3   : > { %v3930_v52 = vadd.f32 %v3929_v22, %v6948_v40  ;;  %v3931_v0 = vpop.f32.mrb[105].mxu0  ;;  %v5037_v19 = vadd.f32 %v5036_v10, %v6948_v40  ;;  %v5038_v15 = vpop.f32.mrb[157].mxu1 }
 0x4c4   : > { %v3932_v4 = vadd.f32 %v3931_v0, %v6948_v40  ;;  %v3933_v46 = vpop.f32.mrb[106].mxu0  ;;  %v5039_v18 = vadd.f32 %v5038_v15, %v6948_v40  ;;  %v5040_v32 = vpop.f32.mrb[158].mxu1 }
 0x4c5   : > { %v5193_v29 = vmax.f32 %v3930_v52, 0.0  ;;  %v3934_v51 = vpop.f32.mrb[107].mxu0  ;;  %v5247_v33 = vmax.f32 %v5037_v19, 0.0  ;;  %v5041_v38 = vpop.f32.mrb[159].mxu1 }
 0x4c6   : > { %v5194_v49 = vmax.f32 %v3932_v4, 0.0  ;;  %v5248_v63 = vmax.f32 %v5039_v18, 0.0 }
 0x4c7   : > { %5321 = vst [vmem:[%s6960_s17 + $0x220] sm:$0xff] %v5193_v29  ;;  %5375 = vst [vmem:[%s6960_s17 + $0x3d0] sm:$0xff] %v5247_v33 }
 0x4c8   : > { %5322 = vst [vmem:[%s6960_s17 + $0x228] sm:$0xff] %v5194_v49  ;;  %5376 = vst [vmem:[%s6960_s17 + $0x3d8] sm:$0xff] %v5248_v63 }
 0x4ca   : > { %v4011_v23 = vpop.f32.mrb[108].mxu0  ;;  %v5118_v7 = vpop.f32.mrb[160].mxu1 }
 0x4cb   : > { %v4012_v31 = vadd.f32 %v4011_v23, %v6948_v40  ;;  %v4013_v41 = vpop.f32.mrb[109].mxu0  ;;  %v5119_v45 = vadd.f32 %v5118_v7, %v6948_v40  ;;  %v5120_v43 = vpop.f32.mrb[161].mxu1 }
 0x4cc   : > { %v4014_v6 = vadd.f32 %v4013_v41, %v6948_v40  ;;  %v4015_v58 = vpop.f32.mrb[110].mxu0  ;;  %v5121_v34 = vadd.f32 %v5120_v43, %v6948_v40  ;;  %v5122_v60 = vpop.f32.mrb[162].mxu1 }
 0x4cd   : > { %v5197_v16 = vmax.f32 %v4012_v31, 0.0  ;;  %v4016_v13 = vpop.f32.mrb[111].mxu0  ;;  %v5251_v37 = vmax.f32 %v5119_v45, 0.0  ;;  %v5123_v1 = vpop.f32.mrb[163].mxu1 }
 0x4ce   : > { %v5198_v47 = vmax.f32 %v4014_v6, 0.0  ;;  %v5252_v21 = vmax.f32 %v5121_v34, 0.0 }
 0x4cf   : > { %5325 = vst [vmem:[%s6960_s17 + $0x240] sm:$0xff] %v5197_v16  ;;  %5379 = vst [vmem:[%s6960_s17 + $0x3f0] sm:$0xff] %v5251_v37 }
 0x4d0   : > { %5326 = vst [vmem:[%s6960_s17 + $0x248] sm:$0xff] %v5198_v47  ;;  %5380 = vst [vmem:[%s6960_s17 + $0x3f8] sm:$0xff] %v5252_v21 }
 0x4d2   : > { %v4093_v11 = vpop.f32.mrb[112].mxu0 }
 0x4d3   : > { %v4094_v17 = vadd.f32 %v4093_v11, %v6948_v40  ;;  %v4095_v25 = vpop.f32.mrb[113].mxu0 }
 0x4d4   : > { %v4096_v57 = vadd.f32 %v4095_v25, %v6948_v40  ;;  %v4097_v30 = vpop.f32.mrb[114].mxu0 }
 0x4d5   : > { %v5201_v5 = vmax.f32 %v4094_v17, 0.0  ;;  %v4098_v24 = vpop.f32.mrb[115].mxu0 }
 0x4d6   : > { %v5202_v35 = vmax.f32 %v4096_v57, 0.0 }
 0x4d7   : > { %5329 = vst [vmem:[%s6960_s17 + $0x260] sm:$0xff] %v5201_v5 }
 0x4d8   : > { %5330 = vst [vmem:[%s6960_s17 + $0x268] sm:$0xff] %v5202_v35 }
 0x4da   : > { %v4175_v14 = vpop.f32.mrb[116].mxu0 }
 0x4db   : > { %v4176_v12 = vadd.f32 %v4175_v14, %v6948_v40  ;;  %v4177_v59 = vpop.f32.mrb[117].mxu0 }
 0x4dc   : > { %v4178_v56 = vadd.f32 %v4177_v59, %v6948_v40  ;;  %v4179_v2 = vpop.f32.mrb[118].mxu0 }
 0x4dd   : > { %v5205_v62 = vmax.f32 %v4176_v12, 0.0  ;;  %v4180_v50 = vpop.f32.mrb[119].mxu0 }
 0x4de   : > { %v5206_v53 = vmax.f32 %v4178_v56, 0.0 }
 0x4df   : > { %5333 = vst [vmem:[%s6960_s17 + $0x280] sm:$0xff] %v5205_v62 }
 0x4e0   : > { %5334 = vst [vmem:[%s6960_s17 + $0x288] sm:$0xff] %v5206_v53 }
 0x4e2   : > { %v4257_v8 = vpop.f32.mrb[120].mxu0 }
 0x4e3   : > { %v4258_v39 = vadd.f32 %v4257_v8, %v6948_v40  ;;  %v4259_v36 = vpop.f32.mrb[121].mxu0 }
 0x4e4   : > { %v4260_v27 = vadd.f32 %v4259_v36, %v6948_v40  ;;  %v4261_v26 = vpop.f32.mrb[122].mxu0 }
 0x4e5   : > { %v5209_v55 = vmax.f32 %v4258_v39, 0.0  ;;  %v4262_v20 = vpop.f32.mrb[123].mxu0 }
 0x4e6   : > { %v5210_v48 = vmax.f32 %v4260_v27, 0.0 }
 0x4e7   : > { %5337 = vst [vmem:[%s6960_s17 + $0x2a0] sm:$0xff] %v5209_v55 }
 0x4e8   : > { %5338 = vst [vmem:[%s6960_s17 + $0x2a8] sm:$0xff] %v5210_v48 }
 0x4ea   : > { %v4339_v28 = vpop.f32.mrb[124].mxu0 }
 0x4eb   : > { %v4340_v3 = vadd.f32 %v4339_v28, %v6948_v40  ;;  %v4341_v44 = vpop.f32.mrb[125].mxu0 }
 0x4ec   : > { %v4342_v42 = vadd.f32 %v4341_v44, %v6948_v40  ;;  %v4343_v54 = vpop.f32.mrb[126].mxu0 }
 0x4ed   : > { %v5213_v61 = vmax.f32 %v4340_v3, 0.0  ;;  %v4344_v9 = vpop.f32.mrb[127].mxu0 }
 0x4ee   : > { %v5214_v22 = vmax.f32 %v4342_v42, 0.0 }
 0x4ef   : > { %5341 = vst [vmem:[%s6960_s17 + $0x2c0] sm:$0xff] %v5213_v61 }
 0x4f0   : > { %5342 = vst [vmem:[%s6960_s17 + $0x2c8] sm:$0xff] %v5214_v22 }
 0x4f2   : > { %v4421_v52 = vpop.f32.mrb[128].mxu0 }
 0x4f3   : > { %v4422_v0 = vadd.f32 %v4421_v52, %v6948_v40  ;;  %v4423_v4 = vpop.f32.mrb[129].mxu0 }
 0x4f4   : > { %v4424_v46 = vadd.f32 %v4423_v4, %v6948_v40  ;;  %v4425_v10 = vpop.f32.mrb[130].mxu0 }
 0x4f5   : > { %v5217_v29 = vmax.f32 %v4422_v0, 0.0  ;;  %v4426_v51 = vpop.f32.mrb[131].mxu0 }
 0x4f6   : > { %v5218_v19 = vmax.f32 %v4424_v46, 0.0 }
 0x4f7   : > { %5345 = vst [vmem:[%s6960_s17 + $0x2e0] sm:$0xff] %v5217_v29 }
 0x4f8   : > { %5346 = vst [vmem:[%s6960_s17 + $0x2e8] sm:$0xff] %v5218_v19 }
 0x4fa   : > { %v4503_v15 = vpop.f32.mrb[132].mxu0 }
 0x4fb   : > { %v4504_v49 = vadd.f32 %v4503_v15, %v6948_v40  ;;  %v4505_v18 = vpop.f32.mrb[133].mxu0 }
 0x4fc   : > { %v4506_v32 = vadd.f32 %v4505_v18, %v6948_v40  ;;  %v4507_v33 = vpop.f32.mrb[134].mxu0 }
 0x4fd   : > { %v5221_v38 = vmax.f32 %v4504_v49, 0.0  ;;  %v4508_v63 = vpop.f32.mrb[135].mxu0 }
 0x4fe   : > { %v5222_v23 = vmax.f32 %v4506_v32, 0.0 }
 0x4ff   : > { %5349 = vst [vmem:[%s6960_s17 + $0x300] sm:$0xff] %v5221_v38 }
 0x500   : > { %5350 = vst [vmem:[%s6960_s17 + $0x308] sm:$0xff] %v5222_v23 }
 0x502   : > { %v4585_v31 = vpop.f32.mrb[136].mxu0 }
 0x503   : > { %v4586_v41 = vadd.f32 %v4585_v31, %v6948_v40  ;;  %v4587_v6 = vpop.f32.mrb[137].mxu0 }
 0x504   : > { %v4588_v58 = vadd.f32 %v4587_v6, %v6948_v40  ;;  %v4589_v7 = vpop.f32.mrb[138].mxu0 }
 0x505   : > { %v5225_v16 = vmax.f32 %v4586_v41, 0.0  ;;  %v4590_v13 = vpop.f32.mrb[139].mxu0 }
 0x506   : > { %v5226_v45 = vmax.f32 %v4588_v58, 0.0 }
 0x507   : > { %5353 = vst [vmem:[%s6960_s17 + $0x320] sm:$0xff] %v5225_v16 }
 0x508   : > { %5354 = vst [vmem:[%s6960_s17 + $0x328] sm:$0xff] %v5226_v45 }
 0x50a   : > { %v4667_v43 = vpop.f32.mrb[140].mxu0 }
 0x50b   : > { %v4668_v47 = vadd.f32 %v4667_v43, %v6948_v40  ;;  %v4669_v34 = vpop.f32.mrb[141].mxu0 }
 0x50c   : > { %v4670_v60 = vadd.f32 %v4669_v34, %v6948_v40  ;;  %v4671_v37 = vpop.f32.mrb[142].mxu0 }
 0x50d   : > { %v5229_v1 = vmax.f32 %v4668_v47, 0.0  ;;  %v4672_v21 = vpop.f32.mrb[143].mxu0 }
 0x50e   : > { %v5230_v11 = vmax.f32 %v4670_v60, 0.0 }
 0x50f   : > { %5357 = vst [vmem:[%s6960_s17 + $0x340] sm:$0xff] %v5229_v1 }
 0x510   : > { %5358 = vst [vmem:[%s6960_s17 + $0x348] sm:$0xff] %v5230_v11 }
 0x512   : > { %v4749_v17 = vpop.f32.mrb[144].mxu0 }
 0x513   : > { %v4750_v25 = vadd.f32 %v4749_v17, %v6948_v40  ;;  %v4751_v57 = vpop.f32.mrb[145].mxu0 }
 0x514   : > { %v4752_v30 = vadd.f32 %v4751_v57, %v6948_v40  ;;  %v4753_v5 = vpop.f32.mrb[146].mxu0 }
 0x515   : > { %v5233_v24 = vmax.f32 %v4750_v25, 0.0  ;;  %v4754_v35 = vpop.f32.mrb[147].mxu0 }
 0x516   : > { %v5234_v14 = vmax.f32 %v4752_v30, 0.0 }
 0x517   : > { %5361 = vst [vmem:[%s6960_s17 + $0x360] sm:$0xff] %v5233_v24 }
 0x518   : > { %5362 = vst [vmem:[%s6960_s17 + $0x368] sm:$0xff] %v5234_v14 }
 0x51a   : > { %v4831_v12 = vpop.f32.mrb[148].mxu0 }
 0x51b   : > { %v4832_v59 = vadd.f32 %v4831_v12, %v6948_v40  ;;  %v4833_v56 = vpop.f32.mrb[149].mxu0 }
 0x51c   : > { %v4834_v2 = vadd.f32 %v4833_v56, %v6948_v40  ;;  %v4835_v62 = vpop.f32.mrb[150].mxu0 }
 0x51d   : > { %v5237_v50 = vmax.f32 %v4832_v59, 0.0  ;;  %v4836_v53 = vpop.f32.mrb[151].mxu0 }
 0x51e   : > { %v5238_v8 = vmax.f32 %v4834_v2, 0.0 }
 0x51f   : > { %5365 = vst [vmem:[%s6960_s17 + $0x380] sm:$0xff] %v5237_v50 }
 0x520   : > { %5366 = vst [vmem:[%s6960_s17 + $0x388] sm:$0xff] %v5238_v8 }
 0x522   : > { %v4913_v39 = vpop.f32.mrb[152].mxu0 }
 0x523   : > { %v4914_v36 = vadd.f32 %v4913_v39, %v6948_v40  ;;  %v4915_v27 = vpop.f32.mrb[153].mxu0 }
 0x524   : > { %v4916_v26 = vadd.f32 %v4915_v27, %v6948_v40  ;;  %v4917_v55 = vpop.f32.mrb[154].mxu0 }
 0x525   : > { %v5241_v20 = vmax.f32 %v4914_v36, 0.0  ;;  %v4918_v48 = vpop.f32.mrb[155].mxu0 }
 0x526   : > { %v5242_v28 = vmax.f32 %v4916_v26, 0.0 }
 0x527   : > { %5369 = vst [vmem:[%s6960_s17 + $0x3a0] sm:$0xff] %v5241_v20 }
 0x528   : > { %5370 = vst [vmem:[%s6960_s17 + $0x3a8] sm:$0xff] %v5242_v28 }
 0x52a   : > { %v4995_v3 = vpop.f32.mrb[156].mxu0 }
 0x52b   : > { %v4996_v44 = vadd.f32 %v4995_v3, %v6948_v40  ;;  %v4997_v42 = vpop.f32.mrb[157].mxu0 }
 0x52c   : > { %v4998_v54 = vadd.f32 %v4997_v42, %v6948_v40  ;;  %v4999_v61 = vpop.f32.mrb[158].mxu0 }
 0x52d   : > { %v5245_v9 = vmax.f32 %v4996_v44, 0.0  ;;  %v5000_v22 = vpop.f32.mrb[159].mxu0 }
 0x52e   : > { %v5246_v52 = vmax.f32 %v4998_v54, 0.0 }
 0x52f   : > { %5373 = vst [vmem:[%s6960_s17 + $0x3c0] sm:$0xff] %v5245_v9 }
 0x530   : > { %5374 = vst [vmem:[%s6960_s17 + $0x3c8] sm:$0xff] %v5246_v52 }
 0x532   : > { %v5077_v0 = vpop.f32.mrb[160].mxu0 }
 0x533   : > { %v5078_v4 = vadd.f32 %v5077_v0, %v6948_v40  ;;  %v5079_v46 = vpop.f32.mrb[161].mxu0 }
 0x534   : > { %v5080_v10 = vadd.f32 %v5079_v46, %v6948_v40  ;;  %v5081_v29 = vpop.f32.mrb[162].mxu0 }
 0x535   : > { %v5249_v51 = vmax.f32 %v5078_v4, 0.0  ;;  %v5082_v19 = vpop.f32.mrb[163].mxu0 }
 0x536   : > { %v5250_v15 = vmax.f32 %v5080_v10, 0.0 }
 0x537   : > { %5377 = vst [vmem:[%s6960_s17 + $0x3e0] sm:$0xff] %v5249_v51 }
 0x538   : > { %5378 = vst [vmem:[%s6960_s17 + $0x3e8] sm:$0xff] %v5250_v15 }
 0x539   : > { %5868 = shalt.err (!%p5865_p2)
}
 0x53a   : > { %s5869_s23 = scalar_lea.hbm %s7298_s12, 16384  ;;  %s5873_s10 = scalar_lea.hbm %s7349_s5, 32768 }
 0x53b   : > { %p5870_p4 = scmp.ne.s32.totalorder %s7298_s12, %s5869_s23  ;;  %p5874_p9 = scmp.lt.u32.totalorder %s7298_s12, %s7349_s5 }
 0x53c   : > { %p5875_p1 = scmp.lt.u32.totalorder %s5873_s10, %s5869_s23  ;;  %p5877_p6 = scmp.lt.u32.totalorder %s5869_s23, %s7298_s12 }
 0x53d   : > { %p5871_p5 = pnand %p5870_p4, %p7356_p11 }
 0x53e   : > { %p5876_p3 = por %p5875_p1, %p5874_p9 }
 0x53f   : > { %p5872_p7 = pneg %p5871_p5 }
 0x540   : > { %p5878_p12 = por %p5877_p6, %p5876_p3 }
 0x542   : > { %p5879_p13 = pnand %p5878_p12, %p5872_p7 }
 0x544   : > { %5882 = shalt.err (!%p5879_p13)
}
 0x545   : > { %5768 = dma.vmem_to_hbm [thread:$0]  (%p7356_p11), %s7300_s26, 16384, %s7298_s12, %s5382_s22  }
 0x546 PF: > { %s5408_s17 = sand.u32 1, %s5909_s18   ;;  %p7357_p8 = scmp.ne.s32.totalorder %s7354_s6, 0 }
 0x547   : > { %p7358_p10 = scmp.ge.s32.totalorder %s5921_s21, 2  ;;  %s5409_s25 = scalar_lea.sflag [#allocation4], %s5408_s17 }
 0x549   : > { %p5775_p0 = pnand %p7358_p10, %p7357_p8 }
 0x54b   : > { %5904 = dma.done.wait (!%p5775_p0), %s5409_s25, 16384  }
 0x54c   : > { %5906 = vsyncadd (!%p5775_p0), %s5409_s25, 4294950912  ;;  %p18_p2 = scmp.ge.s32.totalorder %s5985_s24, 4   ;;  %s7359_s18 = smov %s5913_s19 }
 0x54d   : > { %s7360_s19 = smov %s5917_s20  ;;  %s7361_s20 = smov %s5997_s27 }
 0x54e   : > { %s7362_s21 = smov %s5985_s24  ;;  %20 = sbr.rel (!%p18_p2) target bundleno = 5 (0x5), region = 85 }
 0x555   :  { %5414 = vsyncpa [#allocation3], 1 }
 0x556   :  { %5416 = vsyncpa [#allocation3 + $0x1], 1 }
 0x557   :  { %5417 = vsyncpa [#allocation4], 1 }
 0x558   :  { %5419 = vsyncpa [#allocation4 + $0x1], 1 }

</bundles_post_ra>
